<compile_context>
chip_gen: v6e
topology: v6e:2x2x1
jax: 0.10.0
libtpu: 0.0.40
codegen_flags: <defaults>
</compile_context>

<pallas_src>
import math
import functools

import jax
import jax.numpy as jnp
from jax.experimental import pallas as pl
from jax.experimental.pallas import tpu as pltpu

_INV_SQRT_2PI = 1.0 / math.sqrt(2.0 * math.pi)
_GELU_C = math.sqrt(2.0 / math.pi)


def _gelu_tanh(x):
    # TODO(synk): PyTorch F.gelu defaults to the exact erf form; the tanh
    # approximation is used (max abs deviation < 1e-3) since erf lowering in
    # Mosaic is not guaranteed.
    return 0.5 * x * (1.0 + jnp.tanh(_GELU_C * (x + 0.044715 * x * x * x)))


# -----------------------------------------------------------------------------
# Fused EncoderLayer kernel.
# Grid: (B // Bt, L // tq).  Query tiles are the inner (sequential) axis so
# K/V — computed from the full sequence — are cached in VMEM scratch at tile 0
# and reused by every query tile of the same batch group.  When L fits one
# tile, Bt > 1 batch elements share a grid step.
# -----------------------------------------------------------------------------
def encoder_layer_kernel(
        # inputs
        x_ref,                       # (Bt, L, D) f32
        wqs_ref, bqs_ref,            # fused [Wq | Wsigma] (D, D+H) bf16, bias f32
        wkv_ref, bkv_ref,            # fused [Wk | Wv]     (D, 2D)  bf16, bias f32
        wo_ref, bo_ref,              # out projection, head-major (H, dk, D) bf16
        g1_ref, bt1_ref,             # LayerNorm1
        w1_ref, bc1_ref,             # conv1 (k=1): D -> F
        w2_ref, bc2_ref,             # conv2 (k=1): F -> D
        g2_ref, bt2_ref,             # LayerNorm2
        # outputs
        out_ref,                     # (Bt, tq, D) f32
        series_ref,                  # (Bt, H, tq, L) bf16
        sig_ref,                     # (Bt, tq, H) f32  (raw sigma projection)
        # scratch
        kv_ref,                      # (Bt, L, 2D) bf16, persists across q tiles
        *, n_heads, activation):
    qi = pl.program_id(1)
    Bt, L, D = x_ref.shape
    tq = out_ref.shape[1]
    H = n_heads
    dk = D // H
    scale = 1.0 / math.sqrt(dk)
    f32, bf16 = jnp.float32, jnp.bfloat16

    # ---- K/V for the full sequence: one fused (L,D)x(D,2D) bf16 matmul per
    #      batch element, only on the first query tile, cached densely. ----
    @pl.when(qi == 0)
    def _():
        for b in range(Bt):                                    # static unroll
            kv = jnp.dot(x_ref[b].astype(bf16), wkv_ref[...],
                         preferred_element_type=f32) + bkv_ref[...]     # (L, 2D)
            kv_ref[b] = kv.astype(bf16)

    q0 = pl.multiple_of(qi * tq, tq)

    for b in range(Bt):                                        # static unroll
        x_q = x_ref[b, pl.ds(q0, tq), :]                       # (tq, D) f32

        # ---- fused Q + sigma projection (one wide matmul). ----
        qs = jnp.dot(x_q.astype(bf16), wqs_ref[...],
                     preferred_element_type=f32) + bqs_ref[...]         # (tq, D+H)
        sig_ref[b] = qs[:, D:D + H]                            # raw sigma column(s)

        # ---- attention per head, out-projection folded in (no concat scratch).
        acc = jnp.zeros((tq, D), f32)
        for h in range(H):                                     # static unroll
            q_h = qs[:, h * dk:(h + 1) * dk].astype(bf16)                # (tq, dk)
            k_h = kv_ref[b, :, h * dk:(h + 1) * dk]                      # (L, dk)
            v_h = kv_ref[b, :, D + h * dk:D + (h + 1) * dk]              # (L, dk)

            s = jnp.einsum("qd,kd->qk", q_h, k_h,
                           preferred_element_type=f32) * scale           # (tq, L)
            m = jnp.max(s, axis=-1, keepdims=True)
            e = jnp.exp(s - m)
            # exact reciprocal on a (tq,1) column (review: rows must sum to 1
            # closely enough for downstream KL).
            p = e * pl.reciprocal(jnp.sum(e, axis=-1, keepdims=True))
            series_ref[b, h] = p.astype(bf16)

            vo = jnp.dot(p.astype(bf16), v_h, preferred_element_type=f32)  # (tq,dk)
            acc = acc + jnp.dot(vo.astype(bf16), wo_ref[h],
                                preferred_element_type=f32)              # (tq, D)
        new_x = acc + bo_ref[...]

        # ---- residual + LayerNorm1 ----
        x1 = x_q + new_x
        mu = jnp.mean(x1, axis=-1, keepdims=True)
        var = jnp.mean((x1 - mu) ** 2, axis=-1, keepdims=True)
        xn = (x1 - mu) * jax.lax.rsqrt(var + 1e-5) * g1_ref[...] + bt1_ref[...]

        # ---- position-wise FFN (Conv1d k=1 == per-position Linear). ----
        y = jnp.dot(xn.astype(bf16), w1_ref[...],
                    preferred_element_type=f32) + bc1_ref[...]
        y = jnp.maximum(y, 0.0) if activation == "relu" else _gelu_tanh(y)
        y = jnp.dot(y.astype(bf16), w2_ref[...],
                    preferred_element_type=f32) + bc2_ref[...]

        # ---- residual + LayerNorm2 ----
        z = xn + y
        mu2 = jnp.mean(z, axis=-1, keepdims=True)
        var2 = jnp.mean((z - mu2) ** 2, axis=-1, keepdims=True)
        out_ref[b] = (z - mu2) * jax.lax.rsqrt(var2 + 1e-5) * g2_ref[...] + bt2_ref[...]


# -----------------------------------------------------------------------------
# Wrapper
# -----------------------------------------------------------------------------
def encoder_layer_forward(x, params, dist, n_heads, *, activation="gelu",
                          q_tile=None, batch_tile=None):
    """One EncoderLayer(AttentionLayer(AnomalyAttention), d_model, d_ff).

    x: (B, L, D) float32.  dist: (L, L) |i-j| matrix (win_size == L).
    Returns (out, series, prior, sigma) with the PyTorch module's semantics
    (dropout p=0 / eval).  `series` is returned in bfloat16 (kernel HBM-write
    relief); prior / sigma are exact f32 reconstructed from the sigma column.
    """
    assert activation in ("relu", "gelu")
    B, L, D = x.shape
    H = n_heads
    assert D % H == 0, "d_model must be divisible by n_heads"
    F = params["w1"].shape[1]
    dk = D // H
    f32, bf16 = jnp.float32, jnp.bfloat16

    # Query tile: 128 when the window tiles evenly, else the whole window
    # (typical anomaly-transformer win_size=100 -> one tile).
    if q_tile is not None:
        tq = q_tile
    else:
        tq = 128 if (L >= 128 and L % 128 == 0) else L
    assert L % tq == 0, "win_size must be divisible by the query tile"
    n_qt = L // tq

    # Batch-group several sequences per grid step when the whole window fits
    # in one query tile (amortizes per-step overhead, fills MXU M better).
    Bt = batch_tile if batch_tile is not None else (min(B, 4) if n_qt == 1 else 1)
    while B % Bt:
        Bt -= 1
    assert n_qt == 1 or Bt == 1
    nb = B // Bt

    # Fused projection weights: one wide MXU matmul instead of skinny ones;
    # W_out head-major so the out-projection folds into the head loop.
    wqs = jnp.concatenate([params["wq"], params["wsig"]], axis=1).astype(bf16)
    bqs = jnp.concatenate([params["bq"], params["bsig"]], axis=1).astype(f32)
    wkv = jnp.concatenate([params["wk"], params["wv"]], axis=1).astype(bf16)
    bkv = jnp.concatenate([params["bk"], params["bv"]], axis=1).astype(f32)
    wo_h = params["wo"].reshape(H, dk, D).astype(bf16)

    def rep(shape):                        # replicated (weight) operand
        n = len(shape)
        return pl.BlockSpec(shape, lambda bi, qi, _n=n: (0,) * _n)

    out_shapes = [
        jax.ShapeDtypeStruct((B, L, D), f32),      # layer output
        jax.ShapeDtypeStruct((B, H, L, L), bf16),  # series (softmax attention)
        jax.ShapeDtypeStruct((B, L, H), f32),      # raw sigma projection
    ]

    # VMEM budget (double-buffered grid-varying blocks + weights + scratch),
    # sized to need instead of a blanket 48 MiB (v7x VMEM is 64 MiB).
    est = 2 * (Bt * L * D * 4 + Bt * tq * D * 4 + Bt * H * tq * L * 2 + Bt * tq * H * 4)
    est += 2 * ((D * (D + H) + 2 * D * D + D * D + 2 * D * F) * 2)
    est += Bt * L * 2 * D * 2
    vmem_limit = int(min(64 << 20, max(24 << 20, 2 * est)))

    call = pl.pallas_call(
        functools.partial(encoder_layer_kernel, n_heads=H, activation=activation),
        out_shape=out_shapes,
        grid=(nb, n_qt),     # last axis fastest: query tiles inner, batch outer
        in_specs=[
            pl.BlockSpec((Bt, L, D), lambda bi, qi: (bi, 0, 0)),   # x (full seq)
            rep((D, D + H)), rep((1, D + H)),                      # [Wq|Wsig], bias
            rep((D, 2 * D)), rep((1, 2 * D)),                      # [Wk|Wv],  bias
            rep((H, dk, D)), rep((1, D)),                          # Wout (head-major), bout
            rep((1, D)), rep((1, D)),                              # norm1 g, b
            rep((D, F)), rep((1, F)),                              # conv1 w, b
            rep((F, D)), rep((1, D)),                              # conv2 w, b
            rep((1, D)), rep((1, D)),                              # norm2 g, b
        ],
        out_specs=[
            pl.BlockSpec((Bt, tq, D), lambda bi, qi: (bi, qi, 0)),
            pl.BlockSpec((Bt, H, tq, L), lambda bi, qi: (bi, 0, qi, 0)),
            pl.BlockSpec((Bt, tq, H), lambda bi, qi: (bi, qi, 0)),
        ],
        scratch_shapes=[pltpu.VMEM((Bt, L, 2 * D), bf16)],         # K/V cache
        compiler_params=pltpu.CompilerParams(
            dimension_semantics=("parallel", "arbitrary"),
            vmem_limit_bytes=vmem_limit,
        ),
    )

    out, series, sig = call(
        x,
        wqs, bqs, wkv, bkv,
        wo_h, params["bo"].astype(f32),
        params["g1"].astype(f32), params["bt1"].astype(f32),
        params["w1"].astype(bf16), params["bc1"].astype(f32),
        params["w2"].astype(bf16), params["bc2"].astype(f32),
        params["g2"].astype(f32), params["bt2"].astype(f32),
    )

    # sigma transform + Gaussian prior are pure broadcast-elementwise functions
    # of the (B, L, H) sigma column; doing them here (exact f32) keeps ~1/3 of
    # the (B,H,L,L) HBM writes out of the kernel's pipelined stores.
    s = jnp.transpose(sig, (0, 2, 1))                              # (B, H, L)
    s = jax.nn.sigmoid(s * 5.0) + 1e-5
    s = jnp.power(3.0, s) - 1.0
    sigma = jnp.broadcast_to(s[..., None], (B, H, L, L))
    prior = (_INV_SQRT_2PI / sigma) * jnp.exp(-(dist ** 2) / (2.0 * sigma ** 2))
    return out, series, prior, sigma


# -----------------------------------------------------------------------------
# Pure-JAX f32 reference (same math) for correctness checks.
# -----------------------------------------------------------------------------
def reference_forward(x, p, dist, H, activation="gelu"):
    B, L, D = x.shape
    dk = D // H
    scale = 1.0 / math.sqrt(dk)
    q = (x @ p["wq"] + p["bq"]).reshape(B, L, H, dk)
    k = (x @ p["wk"] + p["bk"]).reshape(B, L, H, dk)
    v = (x @ p["wv"] + p["bv"]).reshape(B, L, H, dk)
    sig = x @ p["wsig"] + p["bsig"]                       # (B, L, H)

    scores = jnp.einsum("blhe,bshe->bhls", q, k) * scale
    series = jax.nn.softmax(scores, axis=-1)

    s = jnp.transpose(sig, (0, 2, 1))                     # (B, H, L)
    s = jax.nn.sigmoid(s * 5.0) + 1e-5
    s = jnp.power(3.0, s) - 1.0
    s_full = jnp.broadcast_to(s[..., None], (B, H, L, L))
    prior = (1.0 / (math.sqrt(2.0 * math.pi) * s_full)
             * jnp.exp(-(dist ** 2) / (2.0 * s_full ** 2)))

    vo = jnp.einsum("bhls,bshd->blhd", series, v).reshape(B, L, H * dk)
    new_x = vo @ p["wo"] + p["bo"]

    x1 = x + new_x
    mu = x1.mean(-1, keepdims=True)
    var = ((x1 - mu) ** 2).mean(-1, keepdims=True)
    xn = (x1 - mu) * jax.lax.rsqrt(var + 1e-5) * p["g1"] + p["bt1"]
    y = xn @ p["w1"] + p["bc1"]
    y = jnp.maximum(y, 0.0) if activation == "relu" else _gelu_tanh(y)
    y = y @ p["w2"] + p["bc2"]
    z = xn + y
    mu2 = z.mean(-1, keepdims=True)
    var2 = ((z - mu2) ** 2).mean(-1, keepdims=True)
    out = (z - mu2) * jax.lax.rsqrt(var2 + 1e-5) * p["g2"] + p["bt2"]
    return out, series, prior, s_full


# -----------------------------------------------------------------------------
def _make_params(key, D, H, F):
    keys = jax.random.split(key, 14)

    def w(k, shape, s=0.05):
        return (s * jax.random.normal(k, shape)).astype(jnp.float32)

    return {
        "wq": w(keys[0], (D, D)),   "bq": w(keys[1], (1, D), 0.01),
        "wk": w(keys[2], (D, D)),   "bk": w(keys[3], (1, D), 0.01),
        "wv": w(keys[4], (D, D)),   "bv": w(keys[5], (1, D), 0.01),
        "wsig": w(keys[6], (D, H), 0.02), "bsig": w(keys[7], (1, H), 0.01),
        "wo": w(keys[8], (D, D)),   "bo": w(keys[9], (1, D), 0.01),
        "g1": jnp.ones((1, D), jnp.float32), "bt1": jnp.zeros((1, D), jnp.float32),
        "w1": w(keys[10], (D, F)),  "bc1": w(keys[11], (1, F), 0.01),
        "w2": w(keys[12], (F, D)),  "bc2": w(keys[13], (1, D), 0.01),
        "g2": jnp.ones((1, D), jnp.float32), "bt2": jnp.zeros((1, D), jnp.float32),
    }


def _run_case(key, B, L, D, H, F, activation="gelu"):
    kp, kx = jax.random.split(key)
    params = _make_params(kp, D, H, F)
    x = jax.random.normal(kx, (B, L, D), dtype=jnp.float32)
    idx = jnp.arange(L, dtype=jnp.float32)
    dist = jnp.abs(idx[:, None] - idx[None, :])

    out, series, prior, sigma = encoder_layer_forward(
        x, params, dist, H, activation=activation)
    jax.block_until_ready((out, series, prior, sigma))

    r_out, r_series, r_prior, r_sigma = reference_forward(
        x, params, dist, H, activation=activation)

    assert out.shape == (B, L, D)
    assert series.shape == (B, H, L, L)
    assert prior.shape == (B, H, L, L)
    assert sigma.shape == (B, H, L, L)
    # Tolerance accounts for bf16 MXU inputs (f32 accumulation) and the bf16
    # series output vs. the pure-f32 reference.
    tol = dict(rtol=2e-2, atol=2e-2)
    assert jnp.allclose(out, r_out, **tol), "out mismatch"
    assert jnp.allclose(series.astype(jnp.float32), r_series, **tol), "series mismatch"
    assert jnp.allclose(prior, r_prior, **tol), "prior mismatch"
    assert jnp.allclose(sigma, r_sigma, **tol), "sigma mismatch"


if __name__ == "__main__":
    root = jax.random.PRNGKey(0)
    k1, k2 = jax.random.split(root)
    # 1) small win_size path: single query tile, batch-grouped grid step
    _run_case(k1, B=2, L=8, D=32, H=4, F=64, activation="gelu")
    # 2) long-window path: query-tile grid axis + K/V cached across tiles
    _run_case(k2, B=2, L=256, D=64, H=2, F=128, activation="gelu")
    print("KERNEL_OK")
</pallas_src>

<mosaic_0001>
module attributes {stable_mosaic.version = 11 : i64} {
  func.func @encoder_layer_kernel(%arg0: i32, %arg1: i32, %arg2: memref<2x8x32xf32, #tpu.memory_space<vmem>>, %arg3: memref<32x36xbf16, #tpu.memory_space<vmem>>, %arg4: memref<1x36xf32, #tpu.memory_space<vmem>>, %arg5: memref<32x64xbf16, #tpu.memory_space<vmem>>, %arg6: memref<1x64xf32, #tpu.memory_space<vmem>>, %arg7: memref<4x8x32xbf16, #tpu.memory_space<vmem>>, %arg8: memref<1x32xf32, #tpu.memory_space<vmem>>, %arg9: memref<1x32xf32, #tpu.memory_space<vmem>>, %arg10: memref<1x32xf32, #tpu.memory_space<vmem>>, %arg11: memref<32x64xbf16, #tpu.memory_space<vmem>>, %arg12: memref<1x64xf32, #tpu.memory_space<vmem>>, %arg13: memref<64x32xbf16, #tpu.memory_space<vmem>>, %arg14: memref<1x32xf32, #tpu.memory_space<vmem>>, %arg15: memref<1x32xf32, #tpu.memory_space<vmem>>, %arg16: memref<1x32xf32, #tpu.memory_space<vmem>>, %arg17: memref<2x8x32xf32, #tpu.memory_space<vmem>>, %arg18: memref<2x4x8x8xbf16, #tpu.memory_space<vmem>>, %arg19: memref<2x8x4xf32, #tpu.memory_space<vmem>>, %arg20: memref<2x8x64xbf16, #tpu.memory_space<vmem>>) attributes {dimension_semantics = [#tpu.dimension_semantics<parallel>, #tpu.dimension_semantics<arbitrary>], iteration_bounds = array<i64: 1, 1>, scalar_prefetch = 0 : i64, scratch_operands = 1 : i64, tpu.core_type = #tpu.core_type<tc>, window_params = [{transform_indices = @transform_0, window_bounds = array<i64: 2, 8, 32>}, {pipeline_mode = #tpu.pipeline_mode<synchronous>, transform_indices = @transform_1, window_bounds = array<i64: 32, 36>}, {pipeline_mode = #tpu.pipeline_mode<synchronous>, transform_indices = @transform_2, window_bounds = array<i64: 1, 36>}, {pipeline_mode = #tpu.pipeline_mode<synchronous>, transform_indices = @transform_3, window_bounds = array<i64: 32, 64>}, {pipeline_mode = #tpu.pipeline_mode<synchronous>, transform_indices = @transform_4, window_bounds = array<i64: 1, 64>}, {pipeline_mode = #tpu.pipeline_mode<synchronous>, transform_indices = @transform_5, window_bounds = array<i64: 4, 8, 32>}, {pipeline_mode = #tpu.pipeline_mode<synchronous>, transform_indices = @transform_6, window_bounds = array<i64: 1, 32>}, {pipeline_mode = #tpu.pipeline_mode<synchronous>, transform_indices = @transform_7, window_bounds = array<i64: 1, 32>}, {pipeline_mode = #tpu.pipeline_mode<synchronous>, transform_indices = @transform_8, window_bounds = array<i64: 1, 32>}, {pipeline_mode = #tpu.pipeline_mode<synchronous>, transform_indices = @transform_9, window_bounds = array<i64: 32, 64>}, {pipeline_mode = #tpu.pipeline_mode<synchronous>, transform_indices = @transform_10, window_bounds = array<i64: 1, 64>}, {pipeline_mode = #tpu.pipeline_mode<synchronous>, transform_indices = @transform_11, window_bounds = array<i64: 64, 32>}, {pipeline_mode = #tpu.pipeline_mode<synchronous>, transform_indices = @transform_12, window_bounds = array<i64: 1, 32>}, {pipeline_mode = #tpu.pipeline_mode<synchronous>, transform_indices = @transform_13, window_bounds = array<i64: 1, 32>}, {pipeline_mode = #tpu.pipeline_mode<synchronous>, transform_indices = @transform_14, window_bounds = array<i64: 1, 32>}, {transform_indices = @transform_15, window_bounds = array<i64: 2, 8, 32>}, {transform_indices = @transform_16, window_bounds = array<i64: 2, 4, 8, 8>}, {transform_indices = @transform_17, window_bounds = array<i64: 2, 8, 4>}]} {
    %c0_i32 = arith.constant 0 : i32
    %0 = arith.cmpi eq, %arg1, %c0_i32 : i32
    %1 = arith.extui %0 : i1 to i32
    %c0_i32_0 = arith.constant 0 : i32
    %2 = arith.cmpi ne, %1, %c0_i32_0 : i32
    scf.if %2 {
      %c0_237 = arith.constant 0 : index
      %c0_238 = arith.constant 0 : index
      %c0_239 = arith.constant 0 : index
      %435 = vector.load %arg2[%c0_237, %c0_238, %c0_239] : memref<2x8x32xf32, #tpu.memory_space<vmem>>, vector<1x8x32xf32>
      %436 = vector.shape_cast %435 : vector<1x8x32xf32> to vector<8x32xf32>
      %437 = arith.truncf %436 : vector<8x32xf32> to vector<8x32xbf16>
      %c0_240 = arith.constant 0 : index
      %c0_241 = arith.constant 0 : index
      %438 = vector.load %arg5[%c0_240, %c0_241] : memref<32x64xbf16, #tpu.memory_space<vmem>>, vector<32x64xbf16>
      %cst_242 = arith.constant dense<0.000000e+00> : vector<8x64xf32>
      %439 = tpu.matmul %437, %438, %cst_242 {dimension_numbers = #tpu.dot_dimension_numbers<[1], [0], [0], [1], [0, 0, 1, 1], [], []>} : vector<8x32xbf16>, vector<32x64xbf16>, vector<8x64xf32> -> vector<8x64xf32>
      %c0_243 = arith.constant 0 : index
      %c0_244 = arith.constant 0 : index
      %440 = vector.load %arg6[%c0_243, %c0_244] : memref<1x64xf32, #tpu.memory_space<vmem>>, vector<1x64xf32>
      %441 = vector.broadcast %440 : vector<1x64xf32> to vector<8x64xf32>
      %442 = arith.addf %439, %441 : vector<8x64xf32>
      %443 = arith.truncf %442 : vector<8x64xf32> to vector<8x64xbf16>
      %c0_245 = arith.constant 0 : index
      %c0_246 = arith.constant 0 : index
      %c0_247 = arith.constant 0 : index
      %444 = vector.load %arg20[%c0_245, %c0_246, %c0_247] : memref<2x8x64xbf16, #tpu.memory_space<vmem>>, vector<1x8x64xbf16>
      %445 = vector.shape_cast %444 : vector<1x8x64xbf16> to vector<8x64xbf16>
      %446 = vector.shape_cast %443 : vector<8x64xbf16> to vector<1x8x64xbf16>
      tpu.vector_store %arg20[%c0_245, %c0_246, %c0_247], %446 {strides = array<i32>} : memref<2x8x64xbf16, #tpu.memory_space<vmem>>, vector<1x8x64xbf16>,
      %c1_248 = arith.constant 1 : index
      %c0_249 = arith.constant 0 : index
      %c0_250 = arith.constant 0 : index
      %447 = vector.load %arg2[%c1_248, %c0_249, %c0_250] : memref<2x8x32xf32, #tpu.memory_space<vmem>>, vector<1x8x32xf32>
      %448 = vector.shape_cast %447 : vector<1x8x32xf32> to vector<8x32xf32>
      %449 = arith.truncf %448 : vector<8x32xf32> to vector<8x32xbf16>
      %c0_251 = arith.constant 0 : index
      %c0_252 = arith.constant 0 : index
      %450 = vector.load %arg5[%c0_251, %c0_252] : memref<32x64xbf16, #tpu.memory_space<vmem>>, vector<32x64xbf16>
      %cst_253 = arith.constant dense<0.000000e+00> : vector<8x64xf32>
      %451 = tpu.matmul %449, %450, %cst_253 {dimension_numbers = #tpu.dot_dimension_numbers<[1], [0], [0], [1], [0, 0, 1, 1], [], []>} : vector<8x32xbf16>, vector<32x64xbf16>, vector<8x64xf32> -> vector<8x64xf32>
      %c0_254 = arith.constant 0 : index
      %c0_255 = arith.constant 0 : index
      %452 = vector.load %arg6[%c0_254, %c0_255] : memref<1x64xf32, #tpu.memory_space<vmem>>, vector<1x64xf32>
      %453 = vector.broadcast %452 : vector<1x64xf32> to vector<8x64xf32>
      %454 = arith.addf %451, %453 : vector<8x64xf32>
      %455 = arith.truncf %454 : vector<8x64xf32> to vector<8x64xbf16>
      %c1_256 = arith.constant 1 : index
      %c0_257 = arith.constant 0 : index
      %c0_258 = arith.constant 0 : index
      %456 = vector.load %arg20[%c1_256, %c0_257, %c0_258] : memref<2x8x64xbf16, #tpu.memory_space<vmem>>, vector<1x8x64xbf16>
      %457 = vector.shape_cast %456 : vector<1x8x64xbf16> to vector<8x64xbf16>
      %458 = vector.shape_cast %455 : vector<8x64xbf16> to vector<1x8x64xbf16>
      tpu.vector_store %arg20[%c1_256, %c0_257, %c0_258], %458 {strides = array<i32>} : memref<2x8x64xbf16, #tpu.memory_space<vmem>>, vector<1x8x64xbf16>,
    } else {
    }
    %c8_i32 = arith.constant 8 : i32
    %3 = arith.muli %arg1, %c8_i32 : i32
    %4 = tpu.assume_multiple %3, 8 : i32
    %c0 = arith.constant 0 : index
    %5 = arith.index_cast %4 : i32 to index
    %c0_1 = arith.constant 0 : index
    %6 = vector.load %arg2[%c0, %5, %c0_1] : memref<2x8x32xf32, #tpu.memory_space<vmem>>, vector<1x8x32xf32>
    %7 = vector.shape_cast %6 : vector<1x8x32xf32> to vector<8x32xf32>
    %8 = arith.truncf %7 : vector<8x32xf32> to vector<8x32xbf16>
    %c0_2 = arith.constant 0 : index
    %c0_3 = arith.constant 0 : index
    %9 = vector.load %arg3[%c0_2, %c0_3] : memref<32x36xbf16, #tpu.memory_space<vmem>>, vector<32x36xbf16>
    %cst = arith.constant dense<0.000000e+00> : vector<8x36xf32>
    %10 = tpu.matmul %8, %9, %cst {dimension_numbers = #tpu.dot_dimension_numbers<[1], [0], [0], [1], [0, 0, 1, 1], [], []>} : vector<8x32xbf16>, vector<32x36xbf16>, vector<8x36xf32> -> vector<8x36xf32>
    %c0_4 = arith.constant 0 : index
    %c0_5 = arith.constant 0 : index
    %11 = vector.load %arg4[%c0_4, %c0_5] : memref<1x36xf32, #tpu.memory_space<vmem>>, vector<1x36xf32>
    %12 = vector.broadcast %11 : vector<1x36xf32> to vector<8x36xf32>
    %13 = arith.addf %10, %12 : vector<8x36xf32>
    %14 = vector.extract_strided_slice %13 {offsets = [0, 32], sizes = [8, 4], strides = [1, 1]} : vector<8x36xf32> to vector<8x4xf32>
    %c0_6 = arith.constant 0 : index
    %c0_7 = arith.constant 0 : index
    %c0_8 = arith.constant 0 : index
    %15 = vector.load %arg19[%c0_6, %c0_7, %c0_8] : memref<2x8x4xf32, #tpu.memory_space<vmem>>, vector<1x8x4xf32>
    %16 = vector.shape_cast %15 : vector<1x8x4xf32> to vector<8x4xf32>
    %17 = vector.shape_cast %14 : vector<8x4xf32> to vector<1x8x4xf32>
    tpu.vector_store %arg19[%c0_6, %c0_7, %c0_8], %17 {strides = array<i32>} : memref<2x8x4xf32, #tpu.memory_space<vmem>>, vector<1x8x4xf32>,
    %cst_9 = arith.constant 0.000000e+00 : f32
    %18 = vector.broadcast %cst_9 : f32 to vector<8x32xf32>
    %19 = vector.extract_strided_slice %13 {offsets = [0, 0], sizes = [8, 8], strides = [1, 1]} : vector<8x36xf32> to vector<8x8xf32>
    %20 = arith.truncf %19 : vector<8x8xf32> to vector<8x8xbf16>
    %c0_10 = arith.constant 0 : index
    %c0_11 = arith.constant 0 : index
    %c0_12 = arith.constant 0 : index
    %21 = vector.load %arg20[%c0_10, %c0_11, %c0_12] : memref<2x8x64xbf16, #tpu.memory_space<vmem>>, vector<1x8x8xbf16>
    %22 = vector.shape_cast %21 : vector<1x8x8xbf16> to vector<8x8xbf16>
    %c0_13 = arith.constant 0 : index
    %c0_14 = arith.constant 0 : index
    %c32 = arith.constant 32 : index
    %23 = vector.load %arg20[%c0_13, %c0_14, %c32] : memref<2x8x64xbf16, #tpu.memory_space<vmem>>, vector<1x8x8xbf16>
    %24 = vector.shape_cast %23 : vector<1x8x8xbf16> to vector<8x8xbf16>
    "tpu.trace_start"() <{level = 10 : i32, message = "qd,kd->qk"}> : () -> ()
    %cst_15 = arith.constant dense<0.000000e+00> : vector<8x8xf32>
    %25 = tpu.matmul %20, %22, %cst_15 {dimension_numbers = #tpu.dot_dimension_numbers<[1], [1], [0], [0], [0, 0, 1, 0], [], []>} : vector<8x8xbf16>, vector<8x8xbf16>, vector<8x8xf32> -> vector<8x8xf32>
    "tpu.trace_stop"() : () -> ()
    %cst_16 = arith.constant 0.353553385 : f32
    %26 = vector.broadcast %cst_16 : f32 to vector<8x8xf32>
    %27 = arith.mulf %25, %26 : vector<8x8xf32>
    %cst_17 = arith.constant dense<0xFF800000> : vector<8xf32>
    %28 = vector.multi_reduction <maximumf>, %27, %cst_17 [1] : vector<8x8xf32> to vector<8xf32>
    %29 = vector.shape_cast %28 : vector<8xf32> to vector<8x1xf32>
    %30 = vector.broadcast %29 : vector<8x1xf32> to vector<8x8xf32>
    %31 = arith.subf %27, %30 : vector<8x8xf32>
    %32 = math.exp %31 : vector<8x8xf32>
    %cst_18 = arith.constant dense<0.000000e+00> : vector<8xf32>
    %33 = vector.multi_reduction <add>, %32, %cst_18 [1] : vector<8x8xf32> to vector<8xf32>
    %34 = vector.shape_cast %33 : vector<8xf32> to vector<8x1xf32>
    %35 = tpu.reciprocal %34 : vector<8x1xf32> -> vector<8x1xf32>
    %36 = vector.broadcast %35 : vector<8x1xf32> to vector<8x8xf32>
    %37 = arith.mulf %32, %36 : vector<8x8xf32>
    %38 = arith.truncf %37 : vector<8x8xf32> to vector<8x8xbf16>
    %c0_19 = arith.constant 0 : index
    %c0_20 = arith.constant 0 : index
    %c0_21 = arith.constant 0 : index
    %c0_22 = arith.constant 0 : index
    %39 = vector.load %arg18[%c0_19, %c0_20, %c0_21, %c0_22] : memref<2x4x8x8xbf16, #tpu.memory_space<vmem>>, vector<1x1x8x8xbf16>
    %40 = vector.shape_cast %39 : vector<1x1x8x8xbf16> to vector<8x8xbf16>
    %41 = vector.shape_cast %38 : vector<8x8xbf16> to vector<1x1x8x8xbf16>
    tpu.vector_store %arg18[%c0_19, %c0_20, %c0_21, %c0_22], %41 {strides = array<i32>} : memref<2x4x8x8xbf16, #tpu.memory_space<vmem>>, vector<1x1x8x8xbf16>,
    %42 = arith.truncf %37 : vector<8x8xf32> to vector<8x8xbf16>
    %cst_23 = arith.constant dense<0.000000e+00> : vector<8x8xf32>
    %43 = tpu.matmul %42, %24, %cst_23 {dimension_numbers = #tpu.dot_dimension_numbers<[1], [0], [0], [1], [0, 0, 1, 1], [], []>} : vector<8x8xbf16>, vector<8x8xbf16>, vector<8x8xf32> -> vector<8x8xf32>
    %44 = arith.truncf %43 : vector<8x8xf32> to vector<8x8xbf16>
    %c0_24 = arith.constant 0 : index
    %c0_25 = arith.constant 0 : index
    %c0_26 = arith.constant 0 : index
    %45 = vector.load %arg7[%c0_24, %c0_25, %c0_26] : memref<4x8x32xbf16, #tpu.memory_space<vmem>>, vector<1x8x32xbf16>
    %46 = vector.shape_cast %45 : vector<1x8x32xbf16> to vector<8x32xbf16>
    %cst_27 = arith.constant dense<0.000000e+00> : vector<8x32xf32>
    %47 = tpu.matmul %44, %46, %cst_27 {dimension_numbers = #tpu.dot_dimension_numbers<[1], [0], [0], [1], [0, 0, 1, 1], [], []>} : vector<8x8xbf16>, vector<8x32xbf16>, vector<8x32xf32> -> vector<8x32xf32>
    %48 = arith.addf %18, %47 : vector<8x32xf32>
    %49 = vector.extract_strided_slice %13 {offsets = [0, 8], sizes = [8, 8], strides = [1, 1]} : vector<8x36xf32> to vector<8x8xf32>
    %50 = arith.truncf %49 : vector<8x8xf32> to vector<8x8xbf16>
    %c0_28 = arith.constant 0 : index
    %c0_29 = arith.constant 0 : index
    %c8 = arith.constant 8 : index
    %51 = vector.load %arg20[%c0_28, %c0_29, %c8] : memref<2x8x64xbf16, #tpu.memory_space<vmem>>, vector<1x8x8xbf16>
    %52 = vector.shape_cast %51 : vector<1x8x8xbf16> to vector<8x8xbf16>
    %c0_30 = arith.constant 0 : index
    %c0_31 = arith.constant 0 : index
    %c40 = arith.constant 40 : index
    %53 = vector.load %arg20[%c0_30, %c0_31, %c40] : memref<2x8x64xbf16, #tpu.memory_space<vmem>>, vector<1x8x8xbf16>
    %54 = vector.shape_cast %53 : vector<1x8x8xbf16> to vector<8x8xbf16>
    "tpu.trace_start"() <{level = 10 : i32, message = "qd,kd->qk"}> : () -> ()
    %cst_32 = arith.constant dense<0.000000e+00> : vector<8x8xf32>
    %55 = tpu.matmul %50, %52, %cst_32 {dimension_numbers = #tpu.dot_dimension_numbers<[1], [1], [0], [0], [0, 0, 1, 0], [], []>} : vector<8x8xbf16>, vector<8x8xbf16>, vector<8x8xf32> -> vector<8x8xf32>
    "tpu.trace_stop"() : () -> ()
    %cst_33 = arith.constant 0.353553385 : f32
    %56 = vector.broadcast %cst_33 : f32 to vector<8x8xf32>
    %57 = arith.mulf %55, %56 : vector<8x8xf32>
    %cst_34 = arith.constant dense<0xFF800000> : vector<8xf32>
    %58 = vector.multi_reduction <maximumf>, %57, %cst_34 [1] : vector<8x8xf32> to vector<8xf32>
    %59 = vector.shape_cast %58 : vector<8xf32> to vector<8x1xf32>
    %60 = vector.broadcast %59 : vector<8x1xf32> to vector<8x8xf32>
    %61 = arith.subf %57, %60 : vector<8x8xf32>
    %62 = math.exp %61 : vector<8x8xf32>
    %cst_35 = arith.constant dense<0.000000e+00> : vector<8xf32>
    %63 = vector.multi_reduction <add>, %62, %cst_35 [1] : vector<8x8xf32> to vector<8xf32>
    %64 = vector.shape_cast %63 : vector<8xf32> to vector<8x1xf32>
    %65 = tpu.reciprocal %64 : vector<8x1xf32> -> vector<8x1xf32>
    %66 = vector.broadcast %65 : vector<8x1xf32> to vector<8x8xf32>
    %67 = arith.mulf %62, %66 : vector<8x8xf32>
    %68 = arith.truncf %67 : vector<8x8xf32> to vector<8x8xbf16>
    %c0_36 = arith.constant 0 : index
    %c1 = arith.constant 1 : index
    %c0_37 = arith.constant 0 : index
    %c0_38 = arith.constant 0 : index
    %69 = vector.load %arg18[%c0_36, %c1, %c0_37, %c0_38] : memref<2x4x8x8xbf16, #tpu.memory_space<vmem>>, vector<1x1x8x8xbf16>
    %70 = vector.shape_cast %69 : vector<1x1x8x8xbf16> to vector<8x8xbf16>
    %71 = vector.shape_cast %68 : vector<8x8xbf16> to vector<1x1x8x8xbf16>
    tpu.vector_store %arg18[%c0_36, %c1, %c0_37, %c0_38], %71 {strides = array<i32>} : memref<2x4x8x8xbf16, #tpu.memory_space<vmem>>, vector<1x1x8x8xbf16>,
    %72 = arith.truncf %67 : vector<8x8xf32> to vector<8x8xbf16>
    %cst_39 = arith.constant dense<0.000000e+00> : vector<8x8xf32>
    %73 = tpu.matmul %72, %54, %cst_39 {dimension_numbers = #tpu.dot_dimension_numbers<[1], [0], [0], [1], [0, 0, 1, 1], [], []>} : vector<8x8xbf16>, vector<8x8xbf16>, vector<8x8xf32> -> vector<8x8xf32>
    %74 = arith.truncf %73 : vector<8x8xf32> to vector<8x8xbf16>
    %c1_40 = arith.constant 1 : index
    %c0_41 = arith.constant 0 : index
    %c0_42 = arith.constant 0 : index
    %75 = vector.load %arg7[%c1_40, %c0_41, %c0_42] : memref<4x8x32xbf16, #tpu.memory_space<vmem>>, vector<1x8x32xbf16>
    %76 = vector.shape_cast %75 : vector<1x8x32xbf16> to vector<8x32xbf16>
    %cst_43 = arith.constant dense<0.000000e+00> : vector<8x32xf32>
    %77 = tpu.matmul %74, %76, %cst_43 {dimension_numbers = #tpu.dot_dimension_numbers<[1], [0], [0], [1], [0, 0, 1, 1], [], []>} : vector<8x8xbf16>, vector<8x32xbf16>, vector<8x32xf32> -> vector<8x32xf32>
    %78 = arith.addf %48, %77 : vector<8x32xf32>
    %79 = vector.extract_strided_slice %13 {offsets = [0, 16], sizes = [8, 8], strides = [1, 1]} : vector<8x36xf32> to vector<8x8xf32>
    %80 = arith.truncf %79 : vector<8x8xf32> to vector<8x8xbf16>
    %c0_44 = arith.constant 0 : index
    %c0_45 = arith.constant 0 : index
    %c16 = arith.constant 16 : index
    %81 = vector.load %arg20[%c0_44, %c0_45, %c16] : memref<2x8x64xbf16, #tpu.memory_space<vmem>>, vector<1x8x8xbf16>
    %82 = vector.shape_cast %81 : vector<1x8x8xbf16> to vector<8x8xbf16>
    %c0_46 = arith.constant 0 : index
    %c0_47 = arith.constant 0 : index
    %c48 = arith.constant 48 : index
    %83 = vector.load %arg20[%c0_46, %c0_47, %c48] : memref<2x8x64xbf16, #tpu.memory_space<vmem>>, vector<1x8x8xbf16>
    %84 = vector.shape_cast %83 : vector<1x8x8xbf16> to vector<8x8xbf16>
    "tpu.trace_start"() <{level = 10 : i32, message = "qd,kd->qk"}> : () -> ()
    %cst_48 = arith.constant dense<0.000000e+00> : vector<8x8xf32>
    %85 = tpu.matmul %80, %82, %cst_48 {dimension_numbers = #tpu.dot_dimension_numbers<[1], [1], [0], [0], [0, 0, 1, 0], [], []>} : vector<8x8xbf16>, vector<8x8xbf16>, vector<8x8xf32> -> vector<8x8xf32>
    "tpu.trace_stop"() : () -> ()
    %cst_49 = arith.constant 0.353553385 : f32
    %86 = vector.broadcast %cst_49 : f32 to vector<8x8xf32>
    %87 = arith.mulf %85, %86 : vector<8x8xf32>
    %cst_50 = arith.constant dense<0xFF800000> : vector<8xf32>
    %88 = vector.multi_reduction <maximumf>, %87, %cst_50 [1] : vector<8x8xf32> to vector<8xf32>
    %89 = vector.shape_cast %88 : vector<8xf32> to vector<8x1xf32>
    %90 = vector.broadcast %89 : vector<8x1xf32> to vector<8x8xf32>
    %91 = arith.subf %87, %90 : vector<8x8xf32>
    %92 = math.exp %91 : vector<8x8xf32>
    %cst_51 = arith.constant dense<0.000000e+00> : vector<8xf32>
    %93 = vector.multi_reduction <add>, %92, %cst_51 [1] : vector<8x8xf32> to vector<8xf32>
    %94 = vector.shape_cast %93 : vector<8xf32> to vector<8x1xf32>
    %95 = tpu.reciprocal %94 : vector<8x1xf32> -> vector<8x1xf32>
    %96 = vector.broadcast %95 : vector<8x1xf32> to vector<8x8xf32>
    %97 = arith.mulf %92, %96 : vector<8x8xf32>
    %98 = arith.truncf %97 : vector<8x8xf32> to vector<8x8xbf16>
    %c0_52 = arith.constant 0 : index
    %c2 = arith.constant 2 : index
    %c0_53 = arith.constant 0 : index
    %c0_54 = arith.constant 0 : index
    %99 = vector.load %arg18[%c0_52, %c2, %c0_53, %c0_54] : memref<2x4x8x8xbf16, #tpu.memory_space<vmem>>, vector<1x1x8x8xbf16>
    %100 = vector.shape_cast %99 : vector<1x1x8x8xbf16> to vector<8x8xbf16>
    %101 = vector.shape_cast %98 : vector<8x8xbf16> to vector<1x1x8x8xbf16>
    tpu.vector_store %arg18[%c0_52, %c2, %c0_53, %c0_54], %101 {strides = array<i32>} : memref<2x4x8x8xbf16, #tpu.memory_space<vmem>>, vector<1x1x8x8xbf16>,
    %102 = arith.truncf %97 : vector<8x8xf32> to vector<8x8xbf16>
    %cst_55 = arith.constant dense<0.000000e+00> : vector<8x8xf32>
    %103 = tpu.matmul %102, %84, %cst_55 {dimension_numbers = #tpu.dot_dimension_numbers<[1], [0], [0], [1], [0, 0, 1, 1], [], []>} : vector<8x8xbf16>, vector<8x8xbf16>, vector<8x8xf32> -> vector<8x8xf32>
    %104 = arith.truncf %103 : vector<8x8xf32> to vector<8x8xbf16>
    %c2_56 = arith.constant 2 : index
    %c0_57 = arith.constant 0 : index
    %c0_58 = arith.constant 0 : index
    %105 = vector.load %arg7[%c2_56, %c0_57, %c0_58] : memref<4x8x32xbf16, #tpu.memory_space<vmem>>, vector<1x8x32xbf16>
    %106 = vector.shape_cast %105 : vector<1x8x32xbf16> to vector<8x32xbf16>
    %cst_59 = arith.constant dense<0.000000e+00> : vector<8x32xf32>
    %107 = tpu.matmul %104, %106, %cst_59 {dimension_numbers = #tpu.dot_dimension_numbers<[1], [0], [0], [1], [0, 0, 1, 1], [], []>} : vector<8x8xbf16>, vector<8x32xbf16>, vector<8x32xf32> -> vector<8x32xf32>
    %108 = arith.addf %78, %107 : vector<8x32xf32>
    %109 = vector.extract_strided_slice %13 {offsets = [0, 24], sizes = [8, 8], strides = [1, 1]} : vector<8x36xf32> to vector<8x8xf32>
    %110 = arith.truncf %109 : vector<8x8xf32> to vector<8x8xbf16>
    %c0_60 = arith.constant 0 : index
    %c0_61 = arith.constant 0 : index
    %c24 = arith.constant 24 : index
    %111 = vector.load %arg20[%c0_60, %c0_61, %c24] : memref<2x8x64xbf16, #tpu.memory_space<vmem>>, vector<1x8x8xbf16>
    %112 = vector.shape_cast %111 : vector<1x8x8xbf16> to vector<8x8xbf16>
    %c0_62 = arith.constant 0 : index
    %c0_63 = arith.constant 0 : index
    %c56 = arith.constant 56 : index
    %113 = vector.load %arg20[%c0_62, %c0_63, %c56] : memref<2x8x64xbf16, #tpu.memory_space<vmem>>, vector<1x8x8xbf16>
    %114 = vector.shape_cast %113 : vector<1x8x8xbf16> to vector<8x8xbf16>
    "tpu.trace_start"() <{level = 10 : i32, message = "qd,kd->qk"}> : () -> ()
    %cst_64 = arith.constant dense<0.000000e+00> : vector<8x8xf32>
    %115 = tpu.matmul %110, %112, %cst_64 {dimension_numbers = #tpu.dot_dimension_numbers<[1], [1], [0], [0], [0, 0, 1, 0], [], []>} : vector<8x8xbf16>, vector<8x8xbf16>, vector<8x8xf32> -> vector<8x8xf32>
    "tpu.trace_stop"() : () -> ()
    %cst_65 = arith.constant 0.353553385 : f32
    %116 = vector.broadcast %cst_65 : f32 to vector<8x8xf32>
    %117 = arith.mulf %115, %116 : vector<8x8xf32>
    %cst_66 = arith.constant dense<0xFF800000> : vector<8xf32>
    %118 = vector.multi_reduction <maximumf>, %117, %cst_66 [1] : vector<8x8xf32> to vector<8xf32>
    %119 = vector.shape_cast %118 : vector<8xf32> to vector<8x1xf32>
    %120 = vector.broadcast %119 : vector<8x1xf32> to vector<8x8xf32>
    %121 = arith.subf %117, %120 : vector<8x8xf32>
    %122 = math.exp %121 : vector<8x8xf32>
    %cst_67 = arith.constant dense<0.000000e+00> : vector<8xf32>
    %123 = vector.multi_reduction <add>, %122, %cst_67 [1] : vector<8x8xf32> to vector<8xf32>
    %124 = vector.shape_cast %123 : vector<8xf32> to vector<8x1xf32>
    %125 = tpu.reciprocal %124 : vector<8x1xf32> -> vector<8x1xf32>
    %126 = vector.broadcast %125 : vector<8x1xf32> to vector<8x8xf32>
    %127 = arith.mulf %122, %126 : vector<8x8xf32>
    %128 = arith.truncf %127 : vector<8x8xf32> to vector<8x8xbf16>
    %c0_68 = arith.constant 0 : index
    %c3 = arith.constant 3 : index
    %c0_69 = arith.constant 0 : index
    %c0_70 = arith.constant 0 : index
    %129 = vector.load %arg18[%c0_68, %c3, %c0_69, %c0_70] : memref<2x4x8x8xbf16, #tpu.memory_space<vmem>>, vector<1x1x8x8xbf16>
    %130 = vector.shape_cast %129 : vector<1x1x8x8xbf16> to vector<8x8xbf16>
    %131 = vector.shape_cast %128 : vector<8x8xbf16> to vector<1x1x8x8xbf16>
    tpu.vector_store %arg18[%c0_68, %c3, %c0_69, %c0_70], %131 {strides = array<i32>} : memref<2x4x8x8xbf16, #tpu.memory_space<vmem>>, vector<1x1x8x8xbf16>,
    %132 = arith.truncf %127 : vector<8x8xf32> to vector<8x8xbf16>
    %cst_71 = arith.constant dense<0.000000e+00> : vector<8x8xf32>
    %133 = tpu.matmul %132, %114, %cst_71 {dimension_numbers = #tpu.dot_dimension_numbers<[1], [0], [0], [1], [0, 0, 1, 1], [], []>} : vector<8x8xbf16>, vector<8x8xbf16>, vector<8x8xf32> -> vector<8x8xf32>
    %134 = arith.truncf %133 : vector<8x8xf32> to vector<8x8xbf16>
    %c3_72 = arith.constant 3 : index
    %c0_73 = arith.constant 0 : index
    %c0_74 = arith.constant 0 : index
    %135 = vector.load %arg7[%c3_72, %c0_73, %c0_74] : memref<4x8x32xbf16, #tpu.memory_space<vmem>>, vector<1x8x32xbf16>
    %136 = vector.shape_cast %135 : vector<1x8x32xbf16> to vector<8x32xbf16>
    %cst_75 = arith.constant dense<0.000000e+00> : vector<8x32xf32>
    %137 = tpu.matmul %134, %136, %cst_75 {dimension_numbers = #tpu.dot_dimension_numbers<[1], [0], [0], [1], [0, 0, 1, 1], [], []>} : vector<8x8xbf16>, vector<8x32xbf16>, vector<8x32xf32> -> vector<8x32xf32>
    %138 = arith.addf %108, %137 : vector<8x32xf32>
    %c0_76 = arith.constant 0 : index
    %c0_77 = arith.constant 0 : index
    %139 = vector.load %arg8[%c0_76, %c0_77] : memref<1x32xf32, #tpu.memory_space<vmem>>, vector<1x32xf32>
    %140 = vector.broadcast %139 : vector<1x32xf32> to vector<8x32xf32>
    %141 = arith.addf %138, %140 : vector<8x32xf32>
    %142 = arith.addf %7, %141 : vector<8x32xf32>
    %cst_78 = arith.constant dense<0.000000e+00> : vector<8xf32>
    %143 = vector.multi_reduction <add>, %142, %cst_78 [1] : vector<8x32xf32> to vector<8xf32>
    %144 = vector.shape_cast %143 : vector<8xf32> to vector<8x1xf32>
    %cst_79 = arith.constant 3.200000e+01 : f32
    %145 = vector.broadcast %cst_79 : f32 to vector<8x1xf32>
    %146 = arith.divf %144, %145 : vector<8x1xf32>
    %147 = vector.broadcast %146 : vector<8x1xf32> to vector<8x32xf32>
    %148 = arith.subf %142, %147 : vector<8x32xf32>
    %149 = arith.mulf %148, %148 : vector<8x32xf32>
    %cst_80 = arith.constant dense<0.000000e+00> : vector<8xf32>
    %150 = vector.multi_reduction <add>, %149, %cst_80 [1] : vector<8x32xf32> to vector<8xf32>
    %151 = vector.shape_cast %150 : vector<8xf32> to vector<8x1xf32>
    %cst_81 = arith.constant 3.200000e+01 : f32
    %152 = vector.broadcast %cst_81 : f32 to vector<8x1xf32>
    %153 = arith.divf %151, %152 : vector<8x1xf32>
    %154 = vector.broadcast %146 : vector<8x1xf32> to vector<8x32xf32>
    %155 = arith.subf %142, %154 : vector<8x32xf32>
    %cst_82 = arith.constant 9.99999974E-6 : f32
    %156 = vector.broadcast %cst_82 : f32 to vector<8x1xf32>
    %157 = arith.addf %153, %156 : vector<8x1xf32>
    %158 = math.rsqrt %157 : vector<8x1xf32>
    %159 = vector.broadcast %158 : vector<8x1xf32> to vector<8x32xf32>
    %160 = arith.mulf %155, %159 : vector<8x32xf32>
    %c0_83 = arith.constant 0 : index
    %c0_84 = arith.constant 0 : index
    %161 = vector.load %arg9[%c0_83, %c0_84] : memref<1x32xf32, #tpu.memory_space<vmem>>, vector<1x32xf32>
    %162 = vector.broadcast %161 : vector<1x32xf32> to vector<8x32xf32>
    %163 = arith.mulf %160, %162 : vector<8x32xf32>
    %c0_85 = arith.constant 0 : index
    %c0_86 = arith.constant 0 : index
    %164 = vector.load %arg10[%c0_85, %c0_86] : memref<1x32xf32, #tpu.memory_space<vmem>>, vector<1x32xf32>
    %165 = vector.broadcast %164 : vector<1x32xf32> to vector<8x32xf32>
    %166 = arith.addf %163, %165 : vector<8x32xf32>
    %167 = arith.truncf %166 : vector<8x32xf32> to vector<8x32xbf16>
    %c0_87 = arith.constant 0 : index
    %c0_88 = arith.constant 0 : index
    %168 = vector.load %arg11[%c0_87, %c0_88] : memref<32x64xbf16, #tpu.memory_space<vmem>>, vector<32x64xbf16>
    %cst_89 = arith.constant dense<0.000000e+00> : vector<8x64xf32>
    %169 = tpu.matmul %167, %168, %cst_89 {dimension_numbers = #tpu.dot_dimension_numbers<[1], [0], [0], [1], [0, 0, 1, 1], [], []>} : vector<8x32xbf16>, vector<32x64xbf16>, vector<8x64xf32> -> vector<8x64xf32>
    %c0_90 = arith.constant 0 : index
    %c0_91 = arith.constant 0 : index
    %170 = vector.load %arg12[%c0_90, %c0_91] : memref<1x64xf32, #tpu.memory_space<vmem>>, vector<1x64xf32>
    %171 = vector.broadcast %170 : vector<1x64xf32> to vector<8x64xf32>
    %172 = arith.addf %169, %171 : vector<8x64xf32>
    %cst_92 = arith.constant 5.000000e-01 : f32
    %173 = vector.broadcast %cst_92 : f32 to vector<8x64xf32>
    %174 = arith.mulf %173, %172 : vector<8x64xf32>
    %cst_93 = arith.constant 4.471500e-02 : f32
    %175 = vector.broadcast %cst_93 : f32 to vector<8x64xf32>
    %176 = arith.mulf %175, %172 : vector<8x64xf32>
    %177 = arith.mulf %176, %172 : vector<8x64xf32>
    %178 = arith.mulf %177, %172 : vector<8x64xf32>
    %179 = arith.addf %172, %178 : vector<8x64xf32>
    %cst_94 = arith.constant 0.797884583 : f32
    %180 = vector.broadcast %cst_94 : f32 to vector<8x64xf32>
    %181 = arith.mulf %180, %179 : vector<8x64xf32>
    %182 = math.tanh %181 : vector<8x64xf32>
    %cst_95 = arith.constant 1.000000e+00 : f32
    %183 = vector.broadcast %cst_95 : f32 to vector<8x64xf32>
    %184 = arith.addf %183, %182 : vector<8x64xf32>
    %185 = arith.mulf %174, %184 : vector<8x64xf32>
    %186 = arith.truncf %185 : vector<8x64xf32> to vector<8x64xbf16>
    %c0_96 = arith.constant 0 : index
    %c0_97 = arith.constant 0 : index
    %187 = vector.load %arg13[%c0_96, %c0_97] : memref<64x32xbf16, #tpu.memory_space<vmem>>, vector<64x32xbf16>
    %cst_98 = arith.constant dense<0.000000e+00> : vector<8x32xf32>
    %188 = tpu.matmul %186, %187, %cst_98 {dimension_numbers = #tpu.dot_dimension_numbers<[1], [0], [0], [1], [0, 0, 1, 1], [], []>} : vector<8x64xbf16>, vector<64x32xbf16>, vector<8x32xf32> -> vector<8x32xf32>
    %c0_99 = arith.constant 0 : index
    %c0_100 = arith.constant 0 : index
    %189 = vector.load %arg14[%c0_99, %c0_100] : memref<1x32xf32, #tpu.memory_space<vmem>>, vector<1x32xf32>
    %190 = vector.broadcast %189 : vector<1x32xf32> to vector<8x32xf32>
    %191 = arith.addf %188, %190 : vector<8x32xf32>
    %192 = arith.addf %166, %191 : vector<8x32xf32>
    %cst_101 = arith.constant dense<0.000000e+00> : vector<8xf32>
    %193 = vector.multi_reduction <add>, %192, %cst_101 [1] : vector<8x32xf32> to vector<8xf32>
    %194 = vector.shape_cast %193 : vector<8xf32> to vector<8x1xf32>
    %cst_102 = arith.constant 3.200000e+01 : f32
    %195 = vector.broadcast %cst_102 : f32 to vector<8x1xf32>
    %196 = arith.divf %194, %195 : vector<8x1xf32>
    %197 = vector.broadcast %196 : vector<8x1xf32> to vector<8x32xf32>
    %198 = arith.subf %192, %197 : vector<8x32xf32>
    %199 = arith.mulf %198, %198 : vector<8x32xf32>
    %cst_103 = arith.constant dense<0.000000e+00> : vector<8xf32>
    %200 = vector.multi_reduction <add>, %199, %cst_103 [1] : vector<8x32xf32> to vector<8xf32>
    %201 = vector.shape_cast %200 : vector<8xf32> to vector<8x1xf32>
    %cst_104 = arith.constant 3.200000e+01 : f32
    %202 = vector.broadcast %cst_104 : f32 to vector<8x1xf32>
    %203 = arith.divf %201, %202 : vector<8x1xf32>
    %204 = vector.broadcast %196 : vector<8x1xf32> to vector<8x32xf32>
    %205 = arith.subf %192, %204 : vector<8x32xf32>
    %cst_105 = arith.constant 9.99999974E-6 : f32
    %206 = vector.broadcast %cst_105 : f32 to vector<8x1xf32>
    %207 = arith.addf %203, %206 : vector<8x1xf32>
    %208 = math.rsqrt %207 : vector<8x1xf32>
    %209 = vector.broadcast %208 : vector<8x1xf32> to vector<8x32xf32>
    %210 = arith.mulf %205, %209 : vector<8x32xf32>
    %c0_106 = arith.constant 0 : index
    %c0_107 = arith.constant 0 : index
    %211 = vector.load %arg15[%c0_106, %c0_107] : memref<1x32xf32, #tpu.memory_space<vmem>>, vector<1x32xf32>
    %212 = vector.broadcast %211 : vector<1x32xf32> to vector<8x32xf32>
    %213 = arith.mulf %210, %212 : vector<8x32xf32>
    %c0_108 = arith.constant 0 : index
    %c0_109 = arith.constant 0 : index
    %214 = vector.load %arg16[%c0_108, %c0_109] : memref<1x32xf32, #tpu.memory_space<vmem>>, vector<1x32xf32>
    %215 = vector.broadcast %214 : vector<1x32xf32> to vector<8x32xf32>
    %216 = arith.addf %213, %215 : vector<8x32xf32>
    %c0_110 = arith.constant 0 : index
    %c0_111 = arith.constant 0 : index
    %c0_112 = arith.constant 0 : index
    %217 = vector.load %arg17[%c0_110, %c0_111, %c0_112] : memref<2x8x32xf32, #tpu.memory_space<vmem>>, vector<1x8x32xf32>
    %218 = vector.shape_cast %217 : vector<1x8x32xf32> to vector<8x32xf32>
    %219 = vector.shape_cast %216 : vector<8x32xf32> to vector<1x8x32xf32>
    tpu.vector_store %arg17[%c0_110, %c0_111, %c0_112], %219 {strides = array<i32>} : memref<2x8x32xf32, #tpu.memory_space<vmem>>, vector<1x8x32xf32>,
    %c1_113 = arith.constant 1 : index
    %220 = arith.index_cast %4 : i32 to index
    %c0_114 = arith.constant 0 : index
    %221 = vector.load %arg2[%c1_113, %220, %c0_114] : memref<2x8x32xf32, #tpu.memory_space<vmem>>, vector<1x8x32xf32>
    %222 = vector.shape_cast %221 : vector<1x8x32xf32> to vector<8x32xf32>
    %223 = arith.truncf %222 : vector<8x32xf32> to vector<8x32xbf16>
    %c0_115 = arith.constant 0 : index
    %c0_116 = arith.constant 0 : index
    %224 = vector.load %arg3[%c0_115, %c0_116] : memref<32x36xbf16, #tpu.memory_space<vmem>>, vector<32x36xbf16>
    %cst_117 = arith.constant dense<0.000000e+00> : vector<8x36xf32>
    %225 = tpu.matmul %223, %224, %cst_117 {dimension_numbers = #tpu.dot_dimension_numbers<[1], [0], [0], [1], [0, 0, 1, 1], [], []>} : vector<8x32xbf16>, vector<32x36xbf16>, vector<8x36xf32> -> vector<8x36xf32>
    %c0_118 = arith.constant 0 : index
    %c0_119 = arith.constant 0 : index
    %226 = vector.load %arg4[%c0_118, %c0_119] : memref<1x36xf32, #tpu.memory_space<vmem>>, vector<1x36xf32>
    %227 = vector.broadcast %226 : vector<1x36xf32> to vector<8x36xf32>
    %228 = arith.addf %225, %227 : vector<8x36xf32>
    %229 = vector.extract_strided_slice %228 {offsets = [0, 32], sizes = [8, 4], strides = [1, 1]} : vector<8x36xf32> to vector<8x4xf32>
    %c1_120 = arith.constant 1 : index
    %c0_121 = arith.constant 0 : index
    %c0_122 = arith.constant 0 : index
    %230 = vector.load %arg19[%c1_120, %c0_121, %c0_122] : memref<2x8x4xf32, #tpu.memory_space<vmem>>, vector<1x8x4xf32>
    %231 = vector.shape_cast %230 : vector<1x8x4xf32> to vector<8x4xf32>
    %232 = vector.shape_cast %229 : vector<8x4xf32> to vector<1x8x4xf32>
    tpu.vector_store %arg19[%c1_120, %c0_121, %c0_122], %232 {strides = array<i32>} : memref<2x8x4xf32, #tpu.memory_space<vmem>>, vector<1x8x4xf32>,
    %cst_123 = arith.constant 0.000000e+00 : f32
    %233 = vector.broadcast %cst_123 : f32 to vector<8x32xf32>
    %234 = vector.extract_strided_slice %228 {offsets = [0, 0], sizes = [8, 8], strides = [1, 1]} : vector<8x36xf32> to vector<8x8xf32>
    %235 = arith.truncf %234 : vector<8x8xf32> to vector<8x8xbf16>
    %c1_124 = arith.constant 1 : index
    %c0_125 = arith.constant 0 : index
    %c0_126 = arith.constant 0 : index
    %236 = vector.load %arg20[%c1_124, %c0_125, %c0_126] : memref<2x8x64xbf16, #tpu.memory_space<vmem>>, vector<1x8x8xbf16>
    %237 = vector.shape_cast %236 : vector<1x8x8xbf16> to vector<8x8xbf16>
    %c1_127 = arith.constant 1 : index
    %c0_128 = arith.constant 0 : index
    %c32_129 = arith.constant 32 : index
    %238 = vector.load %arg20[%c1_127, %c0_128, %c32_129] : memref<2x8x64xbf16, #tpu.memory_space<vmem>>, vector<1x8x8xbf16>
    %239 = vector.shape_cast %238 : vector<1x8x8xbf16> to vector<8x8xbf16>
    "tpu.trace_start"() <{level = 10 : i32, message = "qd,kd->qk"}> : () -> ()
    %cst_130 = arith.constant dense<0.000000e+00> : vector<8x8xf32>
    %240 = tpu.matmul %235, %237, %cst_130 {dimension_numbers = #tpu.dot_dimension_numbers<[1], [1], [0], [0], [0, 0, 1, 0], [], []>} : vector<8x8xbf16>, vector<8x8xbf16>, vector<8x8xf32> -> vector<8x8xf32>
    "tpu.trace_stop"() : () -> ()
    %cst_131 = arith.constant 0.353553385 : f32
    %241 = vector.broadcast %cst_131 : f32 to vector<8x8xf32>
    %242 = arith.mulf %240, %241 : vector<8x8xf32>
    %cst_132 = arith.constant dense<0xFF800000> : vector<8xf32>
    %243 = vector.multi_reduction <maximumf>, %242, %cst_132 [1] : vector<8x8xf32> to vector<8xf32>
    %244 = vector.shape_cast %243 : vector<8xf32> to vector<8x1xf32>
    %245 = vector.broadcast %244 : vector<8x1xf32> to vector<8x8xf32>
    %246 = arith.subf %242, %245 : vector<8x8xf32>
    %247 = math.exp %246 : vector<8x8xf32>
    %cst_133 = arith.constant dense<0.000000e+00> : vector<8xf32>
    %248 = vector.multi_reduction <add>, %247, %cst_133 [1] : vector<8x8xf32> to vector<8xf32>
    %249 = vector.shape_cast %248 : vector<8xf32> to vector<8x1xf32>
    %250 = tpu.reciprocal %249 : vector<8x1xf32> -> vector<8x1xf32>
    %251 = vector.broadcast %250 : vector<8x1xf32> to vector<8x8xf32>
    %252 = arith.mulf %247, %251 : vector<8x8xf32>
    %253 = arith.truncf %252 : vector<8x8xf32> to vector<8x8xbf16>
    %c1_134 = arith.constant 1 : index
    %c0_135 = arith.constant 0 : index
    %c0_136 = arith.constant 0 : index
    %c0_137 = arith.constant 0 : index
    %254 = vector.load %arg18[%c1_134, %c0_135, %c0_136, %c0_137] : memref<2x4x8x8xbf16, #tpu.memory_space<vmem>>, vector<1x1x8x8xbf16>
    %255 = vector.shape_cast %254 : vector<1x1x8x8xbf16> to vector<8x8xbf16>
    %256 = vector.shape_cast %253 : vector<8x8xbf16> to vector<1x1x8x8xbf16>
    tpu.vector_store %arg18[%c1_134, %c0_135, %c0_136, %c0_137], %256 {strides = array<i32>} : memref<2x4x8x8xbf16, #tpu.memory_space<vmem>>, vector<1x1x8x8xbf16>,
    %257 = arith.truncf %252 : vector<8x8xf32> to vector<8x8xbf16>
    %cst_138 = arith.constant dense<0.000000e+00> : vector<8x8xf32>
    %258 = tpu.matmul %257, %239, %cst_138 {dimension_numbers = #tpu.dot_dimension_numbers<[1], [0], [0], [1], [0, 0, 1, 1], [], []>} : vector<8x8xbf16>, vector<8x8xbf16>, vector<8x8xf32> -> vector<8x8xf32>
    %259 = arith.truncf %258 : vector<8x8xf32> to vector<8x8xbf16>
    %c0_139 = arith.constant 0 : index
    %c0_140 = arith.constant 0 : index
    %c0_141 = arith.constant 0 : index
    %260 = vector.load %arg7[%c0_139, %c0_140, %c0_141] : memref<4x8x32xbf16, #tpu.memory_space<vmem>>, vector<1x8x32xbf16>
    %261 = vector.shape_cast %260 : vector<1x8x32xbf16> to vector<8x32xbf16>
    %cst_142 = arith.constant dense<0.000000e+00> : vector<8x32xf32>
    %262 = tpu.matmul %259, %261, %cst_142 {dimension_numbers = #tpu.dot_dimension_numbers<[1], [0], [0], [1], [0, 0, 1, 1], [], []>} : vector<8x8xbf16>, vector<8x32xbf16>, vector<8x32xf32> -> vector<8x32xf32>
    %263 = arith.addf %233, %262 : vector<8x32xf32>
    %264 = vector.extract_strided_slice %228 {offsets = [0, 8], sizes = [8, 8], strides = [1, 1]} : vector<8x36xf32> to vector<8x8xf32>
    %265 = arith.truncf %264 : vector<8x8xf32> to vector<8x8xbf16>
    %c1_143 = arith.constant 1 : index
    %c0_144 = arith.constant 0 : index
    %c8_145 = arith.constant 8 : index
    %266 = vector.load %arg20[%c1_143, %c0_144, %c8_145] : memref<2x8x64xbf16, #tpu.memory_space<vmem>>, vector<1x8x8xbf16>
    %267 = vector.shape_cast %266 : vector<1x8x8xbf16> to vector<8x8xbf16>
    %c1_146 = arith.constant 1 : index
    %c0_147 = arith.constant 0 : index
    %c40_148 = arith.constant 40 : index
    %268 = vector.load %arg20[%c1_146, %c0_147, %c40_148] : memref<2x8x64xbf16, #tpu.memory_space<vmem>>, vector<1x8x8xbf16>
    %269 = vector.shape_cast %268 : vector<1x8x8xbf16> to vector<8x8xbf16>
    "tpu.trace_start"() <{level = 10 : i32, message = "qd,kd->qk"}> : () -> ()
    %cst_149 = arith.constant dense<0.000000e+00> : vector<8x8xf32>
    %270 = tpu.matmul %265, %267, %cst_149 {dimension_numbers = #tpu.dot_dimension_numbers<[1], [1], [0], [0], [0, 0, 1, 0], [], []>} : vector<8x8xbf16>, vector<8x8xbf16>, vector<8x8xf32> -> vector<8x8xf32>
    "tpu.trace_stop"() : () -> ()
    %cst_150 = arith.constant 0.353553385 : f32
    %271 = vector.broadcast %cst_150 : f32 to vector<8x8xf32>
    %272 = arith.mulf %270, %271 : vector<8x8xf32>
    %cst_151 = arith.constant dense<0xFF800000> : vector<8xf32>
    %273 = vector.multi_reduction <maximumf>, %272, %cst_151 [1] : vector<8x8xf32> to vector<8xf32>
    %274 = vector.shape_cast %273 : vector<8xf32> to vector<8x1xf32>
    %275 = vector.broadcast %274 : vector<8x1xf32> to vector<8x8xf32>
    %276 = arith.subf %272, %275 : vector<8x8xf32>
    %277 = math.exp %276 : vector<8x8xf32>
    %cst_152 = arith.constant dense<0.000000e+00> : vector<8xf32>
    %278 = vector.multi_reduction <add>, %277, %cst_152 [1] : vector<8x8xf32> to vector<8xf32>
    %279 = vector.shape_cast %278 : vector<8xf32> to vector<8x1xf32>
    %280 = tpu.reciprocal %279 : vector<8x1xf32> -> vector<8x1xf32>
    %281 = vector.broadcast %280 : vector<8x1xf32> to vector<8x8xf32>
    %282 = arith.mulf %277, %281 : vector<8x8xf32>
    %283 = arith.truncf %282 : vector<8x8xf32> to vector<8x8xbf16>
    %c1_153 = arith.constant 1 : index
    %c1_154 = arith.constant 1 : index
    %c0_155 = arith.constant 0 : index
    %c0_156 = arith.constant 0 : index
    %284 = vector.load %arg18[%c1_153, %c1_154, %c0_155, %c0_156] : memref<2x4x8x8xbf16, #tpu.memory_space<vmem>>, vector<1x1x8x8xbf16>
    %285 = vector.shape_cast %284 : vector<1x1x8x8xbf16> to vector<8x8xbf16>
    %286 = vector.shape_cast %283 : vector<8x8xbf16> to vector<1x1x8x8xbf16>
    tpu.vector_store %arg18[%c1_153, %c1_154, %c0_155, %c0_156], %286 {strides = array<i32>} : memref<2x4x8x8xbf16, #tpu.memory_space<vmem>>, vector<1x1x8x8xbf16>,
    %287 = arith.truncf %282 : vector<8x8xf32> to vector<8x8xbf16>
    %cst_157 = arith.constant dense<0.000000e+00> : vector<8x8xf32>
    %288 = tpu.matmul %287, %269, %cst_157 {dimension_numbers = #tpu.dot_dimension_numbers<[1], [0], [0], [1], [0, 0, 1, 1], [], []>} : vector<8x8xbf16>, vector<8x8xbf16>, vector<8x8xf32> -> vector<8x8xf32>
    %289 = arith.truncf %288 : vector<8x8xf32> to vector<8x8xbf16>
    %c1_158 = arith.constant 1 : index
    %c0_159 = arith.constant 0 : index
    %c0_160 = arith.constant 0 : index
    %290 = vector.load %arg7[%c1_158, %c0_159, %c0_160] : memref<4x8x32xbf16, #tpu.memory_space<vmem>>, vector<1x8x32xbf16>
    %291 = vector.shape_cast %290 : vector<1x8x32xbf16> to vector<8x32xbf16>
    %cst_161 = arith.constant dense<0.000000e+00> : vector<8x32xf32>
    %292 = tpu.matmul %289, %291, %cst_161 {dimension_numbers = #tpu.dot_dimension_numbers<[1], [0], [0], [1], [0, 0, 1, 1], [], []>} : vector<8x8xbf16>, vector<8x32xbf16>, vector<8x32xf32> -> vector<8x32xf32>
    %293 = arith.addf %263, %292 : vector<8x32xf32>
    %294 = vector.extract_strided_slice %228 {offsets = [0, 16], sizes = [8, 8], strides = [1, 1]} : vector<8x36xf32> to vector<8x8xf32>
    %295 = arith.truncf %294 : vector<8x8xf32> to vector<8x8xbf16>
    %c1_162 = arith.constant 1 : index
    %c0_163 = arith.constant 0 : index
    %c16_164 = arith.constant 16 : index
    %296 = vector.load %arg20[%c1_162, %c0_163, %c16_164] : memref<2x8x64xbf16, #tpu.memory_space<vmem>>, vector<1x8x8xbf16>
    %297 = vector.shape_cast %296 : vector<1x8x8xbf16> to vector<8x8xbf16>
    %c1_165 = arith.constant 1 : index
    %c0_166 = arith.constant 0 : index
    %c48_167 = arith.constant 48 : index
    %298 = vector.load %arg20[%c1_165, %c0_166, %c48_167] : memref<2x8x64xbf16, #tpu.memory_space<vmem>>, vector<1x8x8xbf16>
    %299 = vector.shape_cast %298 : vector<1x8x8xbf16> to vector<8x8xbf16>
    "tpu.trace_start"() <{level = 10 : i32, message = "qd,kd->qk"}> : () -> ()
    %cst_168 = arith.constant dense<0.000000e+00> : vector<8x8xf32>
    %300 = tpu.matmul %295, %297, %cst_168 {dimension_numbers = #tpu.dot_dimension_numbers<[1], [1], [0], [0], [0, 0, 1, 0], [], []>} : vector<8x8xbf16>, vector<8x8xbf16>, vector<8x8xf32> -> vector<8x8xf32>
    "tpu.trace_stop"() : () -> ()
    %cst_169 = arith.constant 0.353553385 : f32
    %301 = vector.broadcast %cst_169 : f32 to vector<8x8xf32>
    %302 = arith.mulf %300, %301 : vector<8x8xf32>
    %cst_170 = arith.constant dense<0xFF800000> : vector<8xf32>
    %303 = vector.multi_reduction <maximumf>, %302, %cst_170 [1] : vector<8x8xf32> to vector<8xf32>
    %304 = vector.shape_cast %303 : vector<8xf32> to vector<8x1xf32>
    %305 = vector.broadcast %304 : vector<8x1xf32> to vector<8x8xf32>
    %306 = arith.subf %302, %305 : vector<8x8xf32>
    %307 = math.exp %306 : vector<8x8xf32>
    %cst_171 = arith.constant dense<0.000000e+00> : vector<8xf32>
    %308 = vector.multi_reduction <add>, %307, %cst_171 [1] : vector<8x8xf32> to vector<8xf32>
    %309 = vector.shape_cast %308 : vector<8xf32> to vector<8x1xf32>
    %310 = tpu.reciprocal %309 : vector<8x1xf32> -> vector<8x1xf32>
    %311 = vector.broadcast %310 : vector<8x1xf32> to vector<8x8xf32>
    %312 = arith.mulf %307, %311 : vector<8x8xf32>
    %313 = arith.truncf %312 : vector<8x8xf32> to vector<8x8xbf16>
    %c1_172 = arith.constant 1 : index
    %c2_173 = arith.constant 2 : index
    %c0_174 = arith.constant 0 : index
    %c0_175 = arith.constant 0 : index
    %314 = vector.load %arg18[%c1_172, %c2_173, %c0_174, %c0_175] : memref<2x4x8x8xbf16, #tpu.memory_space<vmem>>, vector<1x1x8x8xbf16>
    %315 = vector.shape_cast %314 : vector<1x1x8x8xbf16> to vector<8x8xbf16>
    %316 = vector.shape_cast %313 : vector<8x8xbf16> to vector<1x1x8x8xbf16>
    tpu.vector_store %arg18[%c1_172, %c2_173, %c0_174, %c0_175], %316 {strides = array<i32>} : memref<2x4x8x8xbf16, #tpu.memory_space<vmem>>, vector<1x1x8x8xbf16>,
    %317 = arith.truncf %312 : vector<8x8xf32> to vector<8x8xbf16>
    %cst_176 = arith.constant dense<0.000000e+00> : vector<8x8xf32>
    %318 = tpu.matmul %317, %299, %cst_176 {dimension_numbers = #tpu.dot_dimension_numbers<[1], [0], [0], [1], [0, 0, 1, 1], [], []>} : vector<8x8xbf16>, vector<8x8xbf16>, vector<8x8xf32> -> vector<8x8xf32>
    %319 = arith.truncf %318 : vector<8x8xf32> to vector<8x8xbf16>
    %c2_177 = arith.constant 2 : index
    %c0_178 = arith.constant 0 : index
    %c0_179 = arith.constant 0 : index
    %320 = vector.load %arg7[%c2_177, %c0_178, %c0_179] : memref<4x8x32xbf16, #tpu.memory_space<vmem>>, vector<1x8x32xbf16>
    %321 = vector.shape_cast %320 : vector<1x8x32xbf16> to vector<8x32xbf16>
    %cst_180 = arith.constant dense<0.000000e+00> : vector<8x32xf32>
    %322 = tpu.matmul %319, %321, %cst_180 {dimension_numbers = #tpu.dot_dimension_numbers<[1], [0], [0], [1], [0, 0, 1, 1], [], []>} : vector<8x8xbf16>, vector<8x32xbf16>, vector<8x32xf32> -> vector<8x32xf32>
    %323 = arith.addf %293, %322 : vector<8x32xf32>
    %324 = vector.extract_strided_slice %228 {offsets = [0, 24], sizes = [8, 8], strides = [1, 1]} : vector<8x36xf32> to vector<8x8xf32>
    %325 = arith.truncf %324 : vector<8x8xf32> to vector<8x8xbf16>
    %c1_181 = arith.constant 1 : index
    %c0_182 = arith.constant 0 : index
    %c24_183 = arith.constant 24 : index
    %326 = vector.load %arg20[%c1_181, %c0_182, %c24_183] : memref<2x8x64xbf16, #tpu.memory_space<vmem>>, vector<1x8x8xbf16>
    %327 = vector.shape_cast %326 : vector<1x8x8xbf16> to vector<8x8xbf16>
    %c1_184 = arith.constant 1 : index
    %c0_185 = arith.constant 0 : index
    %c56_186 = arith.constant 56 : index
    %328 = vector.load %arg20[%c1_184, %c0_185, %c56_186] : memref<2x8x64xbf16, #tpu.memory_space<vmem>>, vector<1x8x8xbf16>
    %329 = vector.shape_cast %328 : vector<1x8x8xbf16> to vector<8x8xbf16>
    "tpu.trace_start"() <{level = 10 : i32, message = "qd,kd->qk"}> : () -> ()
    %cst_187 = arith.constant dense<0.000000e+00> : vector<8x8xf32>
    %330 = tpu.matmul %325, %327, %cst_187 {dimension_numbers = #tpu.dot_dimension_numbers<[1], [1], [0], [0], [0, 0, 1, 0], [], []>} : vector<8x8xbf16>, vector<8x8xbf16>, vector<8x8xf32> -> vector<8x8xf32>
    "tpu.trace_stop"() : () -> ()
    %cst_188 = arith.constant 0.353553385 : f32
    %331 = vector.broadcast %cst_188 : f32 to vector<8x8xf32>
    %332 = arith.mulf %330, %331 : vector<8x8xf32>
    %cst_189 = arith.constant dense<0xFF800000> : vector<8xf32>
    %333 = vector.multi_reduction <maximumf>, %332, %cst_189 [1] : vector<8x8xf32> to vector<8xf32>
    %334 = vector.shape_cast %333 : vector<8xf32> to vector<8x1xf32>
    %335 = vector.broadcast %334 : vector<8x1xf32> to vector<8x8xf32>
    %336 = arith.subf %332, %335 : vector<8x8xf32>
    %337 = math.exp %336 : vector<8x8xf32>
    %cst_190 = arith.constant dense<0.000000e+00> : vector<8xf32>
    %338 = vector.multi_reduction <add>, %337, %cst_190 [1] : vector<8x8xf32> to vector<8xf32>
    %339 = vector.shape_cast %338 : vector<8xf32> to vector<8x1xf32>
    %340 = tpu.reciprocal %339 : vector<8x1xf32> -> vector<8x1xf32>
    %341 = vector.broadcast %340 : vector<8x1xf32> to vector<8x8xf32>
    %342 = arith.mulf %337, %341 : vector<8x8xf32>
    %343 = arith.truncf %342 : vector<8x8xf32> to vector<8x8xbf16>
    %c1_191 = arith.constant 1 : index
    %c3_192 = arith.constant 3 : index
    %c0_193 = arith.constant 0 : index
    %c0_194 = arith.constant 0 : index
    %344 = vector.load %arg18[%c1_191, %c3_192, %c0_193, %c0_194] : memref<2x4x8x8xbf16, #tpu.memory_space<vmem>>, vector<1x1x8x8xbf16>
    %345 = vector.shape_cast %344 : vector<1x1x8x8xbf16> to vector<8x8xbf16>
    %346 = vector.shape_cast %343 : vector<8x8xbf16> to vector<1x1x8x8xbf16>
    tpu.vector_store %arg18[%c1_191, %c3_192, %c0_193, %c0_194], %346 {strides = array<i32>} : memref<2x4x8x8xbf16, #tpu.memory_space<vmem>>, vector<1x1x8x8xbf16>,
    %347 = arith.truncf %342 : vector<8x8xf32> to vector<8x8xbf16>
    %cst_195 = arith.constant dense<0.000000e+00> : vector<8x8xf32>
    %348 = tpu.matmul %347, %329, %cst_195 {dimension_numbers = #tpu.dot_dimension_numbers<[1], [0], [0], [1], [0, 0, 1, 1], [], []>} : vector<8x8xbf16>, vector<8x8xbf16>, vector<8x8xf32> -> vector<8x8xf32>
    %349 = arith.truncf %348 : vector<8x8xf32> to vector<8x8xbf16>
    %c3_196 = arith.constant 3 : index
    %c0_197 = arith.constant 0 : index
    %c0_198 = arith.constant 0 : index
    %350 = vector.load %arg7[%c3_196, %c0_197, %c0_198] : memref<4x8x32xbf16, #tpu.memory_space<vmem>>, vector<1x8x32xbf16>
    %351 = vector.shape_cast %350 : vector<1x8x32xbf16> to vector<8x32xbf16>
    %cst_199 = arith.constant dense<0.000000e+00> : vector<8x32xf32>
    %352 = tpu.matmul %349, %351, %cst_199 {dimension_numbers = #tpu.dot_dimension_numbers<[1], [0], [0], [1], [0, 0, 1, 1], [], []>} : vector<8x8xbf16>, vector<8x32xbf16>, vector<8x32xf32> -> vector<8x32xf32>
    %353 = arith.addf %323, %352 : vector<8x32xf32>
    %c0_200 = arith.constant 0 : index
    %c0_201 = arith.constant 0 : index
    %354 = vector.load %arg8[%c0_200, %c0_201] : memref<1x32xf32, #tpu.memory_space<vmem>>, vector<1x32xf32>
    %355 = vector.broadcast %354 : vector<1x32xf32> to vector<8x32xf32>
    %356 = arith.addf %353, %355 : vector<8x32xf32>
    %357 = arith.addf %222, %356 : vector<8x32xf32>
    %cst_202 = arith.constant dense<0.000000e+00> : vector<8xf32>
    %358 = vector.multi_reduction <add>, %357, %cst_202 [1] : vector<8x32xf32> to vector<8xf32>
    %359 = vector.shape_cast %358 : vector<8xf32> to vector<8x1xf32>
    %cst_203 = arith.constant 3.200000e+01 : f32
    %360 = vector.broadcast %cst_203 : f32 to vector<8x1xf32>
    %361 = arith.divf %359, %360 : vector<8x1xf32>
    %362 = vector.broadcast %361 : vector<8x1xf32> to vector<8x32xf32>
    %363 = arith.subf %357, %362 : vector<8x32xf32>
    %364 = arith.mulf %363, %363 : vector<8x32xf32>
    %cst_204 = arith.constant dense<0.000000e+00> : vector<8xf32>
    %365 = vector.multi_reduction <add>, %364, %cst_204 [1] : vector<8x32xf32> to vector<8xf32>
    %366 = vector.shape_cast %365 : vector<8xf32> to vector<8x1xf32>
    %cst_205 = arith.constant 3.200000e+01 : f32
    %367 = vector.broadcast %cst_205 : f32 to vector<8x1xf32>
    %368 = arith.divf %366, %367 : vector<8x1xf32>
    %369 = vector.broadcast %361 : vector<8x1xf32> to vector<8x32xf32>
    %370 = arith.subf %357, %369 : vector<8x32xf32>
    %cst_206 = arith.constant 9.99999974E-6 : f32
    %371 = vector.broadcast %cst_206 : f32 to vector<8x1xf32>
    %372 = arith.addf %368, %371 : vector<8x1xf32>
    %373 = math.rsqrt %372 : vector<8x1xf32>
    %374 = vector.broadcast %373 : vector<8x1xf32> to vector<8x32xf32>
    %375 = arith.mulf %370, %374 : vector<8x32xf32>
    %c0_207 = arith.constant 0 : index
    %c0_208 = arith.constant 0 : index
    %376 = vector.load %arg9[%c0_207, %c0_208] : memref<1x32xf32, #tpu.memory_space<vmem>>, vector<1x32xf32>
    %377 = vector.broadcast %376 : vector<1x32xf32> to vector<8x32xf32>
    %378 = arith.mulf %375, %377 : vector<8x32xf32>
    %c0_209 = arith.constant 0 : index
    %c0_210 = arith.constant 0 : index
    %379 = vector.load %arg10[%c0_209, %c0_210] : memref<1x32xf32, #tpu.memory_space<vmem>>, vector<1x32xf32>
    %380 = vector.broadcast %379 : vector<1x32xf32> to vector<8x32xf32>
    %381 = arith.addf %378, %380 : vector<8x32xf32>
    %382 = arith.truncf %381 : vector<8x32xf32> to vector<8x32xbf16>
    %c0_211 = arith.constant 0 : index
    %c0_212 = arith.constant 0 : index
    %383 = vector.load %arg11[%c0_211, %c0_212] : memref<32x64xbf16, #tpu.memory_space<vmem>>, vector<32x64xbf16>
    %cst_213 = arith.constant dense<0.000000e+00> : vector<8x64xf32>
    %384 = tpu.matmul %382, %383, %cst_213 {dimension_numbers = #tpu.dot_dimension_numbers<[1], [0], [0], [1], [0, 0, 1, 1], [], []>} : vector<8x32xbf16>, vector<32x64xbf16>, vector<8x64xf32> -> vector<8x64xf32>
    %c0_214 = arith.constant 0 : index
    %c0_215 = arith.constant 0 : index
    %385 = vector.load %arg12[%c0_214, %c0_215] : memref<1x64xf32, #tpu.memory_space<vmem>>, vector<1x64xf32>
    %386 = vector.broadcast %385 : vector<1x64xf32> to vector<8x64xf32>
    %387 = arith.addf %384, %386 : vector<8x64xf32>
    %cst_216 = arith.constant 5.000000e-01 : f32
    %388 = vector.broadcast %cst_216 : f32 to vector<8x64xf32>
    %389 = arith.mulf %388, %387 : vector<8x64xf32>
    %cst_217 = arith.constant 4.471500e-02 : f32
    %390 = vector.broadcast %cst_217 : f32 to vector<8x64xf32>
    %391 = arith.mulf %390, %387 : vector<8x64xf32>
    %392 = arith.mulf %391, %387 : vector<8x64xf32>
    %393 = arith.mulf %392, %387 : vector<8x64xf32>
    %394 = arith.addf %387, %393 : vector<8x64xf32>
    %cst_218 = arith.constant 0.797884583 : f32
    %395 = vector.broadcast %cst_218 : f32 to vector<8x64xf32>
    %396 = arith.mulf %395, %394 : vector<8x64xf32>
    %397 = math.tanh %396 : vector<8x64xf32>
    %cst_219 = arith.constant 1.000000e+00 : f32
    %398 = vector.broadcast %cst_219 : f32 to vector<8x64xf32>
    %399 = arith.addf %398, %397 : vector<8x64xf32>
    %400 = arith.mulf %389, %399 : vector<8x64xf32>
    %401 = arith.truncf %400 : vector<8x64xf32> to vector<8x64xbf16>
    %c0_220 = arith.constant 0 : index
    %c0_221 = arith.constant 0 : index
    %402 = vector.load %arg13[%c0_220, %c0_221] : memref<64x32xbf16, #tpu.memory_space<vmem>>, vector<64x32xbf16>
    %cst_222 = arith.constant dense<0.000000e+00> : vector<8x32xf32>
    %403 = tpu.matmul %401, %402, %cst_222 {dimension_numbers = #tpu.dot_dimension_numbers<[1], [0], [0], [1], [0, 0, 1, 1], [], []>} : vector<8x64xbf16>, vector<64x32xbf16>, vector<8x32xf32> -> vector<8x32xf32>
    %c0_223 = arith.constant 0 : index
    %c0_224 = arith.constant 0 : index
    %404 = vector.load %arg14[%c0_223, %c0_224] : memref<1x32xf32, #tpu.memory_space<vmem>>, vector<1x32xf32>
    %405 = vector.broadcast %404 : vector<1x32xf32> to vector<8x32xf32>
    %406 = arith.addf %403, %405 : vector<8x32xf32>
    %407 = arith.addf %381, %406 : vector<8x32xf32>
    %cst_225 = arith.constant dense<0.000000e+00> : vector<8xf32>
    %408 = vector.multi_reduction <add>, %407, %cst_225 [1] : vector<8x32xf32> to vector<8xf32>
    %409 = vector.shape_cast %408 : vector<8xf32> to vector<8x1xf32>
    %cst_226 = arith.constant 3.200000e+01 : f32
    %410 = vector.broadcast %cst_226 : f32 to vector<8x1xf32>
    %411 = arith.divf %409, %410 : vector<8x1xf32>
    %412 = vector.broadcast %411 : vector<8x1xf32> to vector<8x32xf32>
    %413 = arith.subf %407, %412 : vector<8x32xf32>
    %414 = arith.mulf %413, %413 : vector<8x32xf32>
    %cst_227 = arith.constant dense<0.000000e+00> : vector<8xf32>
    %415 = vector.multi_reduction <add>, %414, %cst_227 [1] : vector<8x32xf32> to vector<8xf32>
    %416 = vector.shape_cast %415 : vector<8xf32> to vector<8x1xf32>
    %cst_228 = arith.constant 3.200000e+01 : f32
    %417 = vector.broadcast %cst_228 : f32 to vector<8x1xf32>
    %418 = arith.divf %416, %417 : vector<8x1xf32>
    %419 = vector.broadcast %411 : vector<8x1xf32> to vector<8x32xf32>
    %420 = arith.subf %407, %419 : vector<8x32xf32>
    %cst_229 = arith.constant 9.99999974E-6 : f32
    %421 = vector.broadcast %cst_229 : f32 to vector<8x1xf32>
    %422 = arith.addf %418, %421 : vector<8x1xf32>
    %423 = math.rsqrt %422 : vector<8x1xf32>
    %424 = vector.broadcast %423 : vector<8x1xf32> to vector<8x32xf32>
    %425 = arith.mulf %420, %424 : vector<8x32xf32>
    %c0_230 = arith.constant 0 : index
    %c0_231 = arith.constant 0 : index
    %426 = vector.load %arg15[%c0_230, %c0_231] : memref<1x32xf32, #tpu.memory_space<vmem>>, vector<1x32xf32>
    %427 = vector.broadcast %426 : vector<1x32xf32> to vector<8x32xf32>
    %428 = arith.mulf %425, %427 : vector<8x32xf32>
    %c0_232 = arith.constant 0 : index
    %c0_233 = arith.constant 0 : index
    %429 = vector.load %arg16[%c0_232, %c0_233] : memref<1x32xf32, #tpu.memory_space<vmem>>, vector<1x32xf32>
    %430 = vector.broadcast %429 : vector<1x32xf32> to vector<8x32xf32>
    %431 = arith.addf %428, %430 : vector<8x32xf32>
    %c1_234 = arith.constant 1 : index
    %c0_235 = arith.constant 0 : index
    %c0_236 = arith.constant 0 : index
    %432 = vector.load %arg17[%c1_234, %c0_235, %c0_236] : memref<2x8x32xf32, #tpu.memory_space<vmem>>, vector<1x8x32xf32>
    %433 = vector.shape_cast %432 : vector<1x8x32xf32> to vector<8x32xf32>
    %434 = vector.shape_cast %431 : vector<8x32xf32> to vector<1x8x32xf32>
    tpu.vector_store %arg17[%c1_234, %c0_235, %c0_236], %434 {strides = array<i32>} : memref<2x8x32xf32, #tpu.memory_space<vmem>>, vector<1x8x32xf32>,
    return
  }
  func.func @transform_0(%arg0: i32, %arg1: i32) -> (i32, i32, i32) {
    %c0_i32 = arith.constant 0 : i32
    %c0_i32_0 = arith.constant 0 : i32
    %c0_i32_1 = arith.constant 0 : i32
    return %arg0, %c0_i32, %c0_i32_0 : i32, i32, i32
  }
  func.func @transform_1(%arg0: i32, %arg1: i32) -> (i32, i32) {
    %c0_i32 = arith.constant 0 : i32
    %c0_i32_0 = arith.constant 0 : i32
    %c0_i32_1 = arith.constant 0 : i32
    return %c0_i32, %c0_i32_0 : i32, i32
  }
  func.func @transform_2(%arg0: i32, %arg1: i32) -> (i32, i32) {
    %c0_i32 = arith.constant 0 : i32
    %c0_i32_0 = arith.constant 0 : i32
    %c0_i32_1 = arith.constant 0 : i32
    return %c0_i32, %c0_i32_0 : i32, i32
  }
  func.func @transform_3(%arg0: i32, %arg1: i32) -> (i32, i32) {
    %c0_i32 = arith.constant 0 : i32
    %c0_i32_0 = arith.constant 0 : i32
    %c0_i32_1 = arith.constant 0 : i32
    return %c0_i32, %c0_i32_0 : i32, i32
  }
  func.func @transform_4(%arg0: i32, %arg1: i32) -> (i32, i32) {
    %c0_i32 = arith.constant 0 : i32
    %c0_i32_0 = arith.constant 0 : i32
    %c0_i32_1 = arith.constant 0 : i32
    return %c0_i32, %c0_i32_0 : i32, i32
  }
  func.func @transform_5(%arg0: i32, %arg1: i32) -> (i32, i32, i32) {
    %c0_i32 = arith.constant 0 : i32
    %c0_i32_0 = arith.constant 0 : i32
    %c0_i32_1 = arith.constant 0 : i32
    %c0_i32_2 = arith.constant 0 : i32
    return %c0_i32, %c0_i32_0, %c0_i32_1 : i32, i32, i32
  }
  func.func @transform_6(%arg0: i32, %arg1: i32) -> (i32, i32) {
    %c0_i32 = arith.constant 0 : i32
    %c0_i32_0 = arith.constant 0 : i32
    %c0_i32_1 = arith.constant 0 : i32
    return %c0_i32, %c0_i32_0 : i32, i32
  }
  func.func @transform_7(%arg0: i32, %arg1: i32) -> (i32, i32) {
    %c0_i32 = arith.constant 0 : i32
    %c0_i32_0 = arith.constant 0 : i32
    %c0_i32_1 = arith.constant 0 : i32
    return %c0_i32, %c0_i32_0 : i32, i32
  }
  func.func @transform_8(%arg0: i32, %arg1: i32) -> (i32, i32) {
    %c0_i32 = arith.constant 0 : i32
    %c0_i32_0 = arith.constant 0 : i32
    %c0_i32_1 = arith.constant 0 : i32
    return %c0_i32, %c0_i32_0 : i32, i32
  }
  func.func @transform_9(%arg0: i32, %arg1: i32) -> (i32, i32) {
    %c0_i32 = arith.constant 0 : i32
    %c0_i32_0 = arith.constant 0 : i32
    %c0_i32_1 = arith.constant 0 : i32
    return %c0_i32, %c0_i32_0 : i32, i32
  }
  func.func @transform_10(%arg0: i32, %arg1: i32) -> (i32, i32) {
    %c0_i32 = arith.constant 0 : i32
    %c0_i32_0 = arith.constant 0 : i32
    %c0_i32_1 = arith.constant 0 : i32
    return %c0_i32, %c0_i32_0 : i32, i32
  }
  func.func @transform_11(%arg0: i32, %arg1: i32) -> (i32, i32) {
    %c0_i32 = arith.constant 0 : i32
    %c0_i32_0 = arith.constant 0 : i32
    %c0_i32_1 = arith.constant 0 : i32
    return %c0_i32, %c0_i32_0 : i32, i32
  }
  func.func @transform_12(%arg0: i32, %arg1: i32) -> (i32, i32) {
    %c0_i32 = arith.constant 0 : i32
    %c0_i32_0 = arith.constant 0 : i32
    %c0_i32_1 = arith.constant 0 : i32
    return %c0_i32, %c0_i32_0 : i32, i32
  }
  func.func @transform_13(%arg0: i32, %arg1: i32) -> (i32, i32) {
    %c0_i32 = arith.constant 0 : i32
    %c0_i32_0 = arith.constant 0 : i32
    %c0_i32_1 = arith.constant 0 : i32
    return %c0_i32, %c0_i32_0 : i32, i32
  }
  func.func @transform_14(%arg0: i32, %arg1: i32) -> (i32, i32) {
    %c0_i32 = arith.constant 0 : i32
    %c0_i32_0 = arith.constant 0 : i32
    %c0_i32_1 = arith.constant 0 : i32
    return %c0_i32, %c0_i32_0 : i32, i32
  }
  func.func @transform_15(%arg0: i32, %arg1: i32) -> (i32, i32, i32) {
    %c0_i32 = arith.constant 0 : i32
    %c0_i32_0 = arith.constant 0 : i32
    return %arg0, %arg1, %c0_i32 : i32, i32, i32
  }
  func.func @transform_16(%arg0: i32, %arg1: i32) -> (i32, i32, i32, i32) {
    %c0_i32 = arith.constant 0 : i32
    %c0_i32_0 = arith.constant 0 : i32
    %c0_i32_1 = arith.constant 0 : i32
    return %arg0, %c0_i32, %arg1, %c0_i32_0 : i32, i32, i32, i32
  }
  func.func @transform_17(%arg0: i32, %arg1: i32) -> (i32, i32, i32) {
    %c0_i32 = arith.constant 0 : i32
    %c0_i32_0 = arith.constant 0 : i32
    return %arg0, %arg1, %c0_i32 : i32, i32, i32
  }
}

</mosaic_0001>

<bundles_post_ra>
// kernel: tpu_custom_call.1
= control target key start
LH: loop header
LB: loop body
LE: loop exit
PB: predicated region body
PF: predicated region fallthrough
CT: control target
= control target key end

     0   :  { %s3439_s0 = inlined_call_operand.vmem [shape: f32[2,8,32], index: 0, kind: input, shape index: {}]   ;;  %s3440_s1 = inlined_call_operand.vmem [shape: bf16[32,36], index: 1, kind: input, shape index: {}]   ;;  %s3441_s2 = inlined_call_operand.hbm [shape: f32[1,36], index: 2, kind: input, shape index: {}]   ;;  %s3442_s3 = inlined_call_operand.vmem [shape: bf16[32,64], index: 3, kind: input, shape index: {}]   ;;  %s3443_s4 = inlined_call_operand.hbm [shape: f32[1,64], index: 4, kind: input, shape index: {}]   ;;  %s3444_s5 = inlined_call_operand.hbm [shape: bf16[4,8,32], index: 5, kind: input, shape index: {}]   ;;  %s3445_s6 = inlined_call_operand.hbm [shape: f32[1,32], index: 6, kind: input, shape index: {}]   ;;  %s3446_s7 = inlined_call_operand.hbm [shape: f32[1,32], index: 7, kind: input, shape index: {}]   ;;  %s3447_s8 = inlined_call_operand.hbm [shape: f32[1,32], index: 8, kind: input, shape index: {}]   ;;  %s3448_s9 = inlined_call_operand.vmem [shape: bf16[32,64], index: 9, kind: input, shape index: {}]   ;;  %s3449_s10 = inlined_call_operand.vmem [shape: f32[1,64], index: 10, kind: input, shape index: {}]   ;;  %s3450_s11 = inlined_call_operand.vmem [shape: bf16[64,32], index: 11, kind: input, shape index: {}]   ;;  %s3451_s12 = inlined_call_operand.vmem [shape: f32[1,32], index: 12, kind: input, shape index: {}]   ;;  %s3452_s13 = inlined_call_operand.vmem [shape: f32[1,32], index: 13, kind: input, shape index: {}]   ;;  %s3453_s14 = inlined_call_operand.vmem [shape: f32[1,32], index: 14, kind: input, shape index: {}]   ;;  %s3454_s15 = inlined_call_operand.hbm [shape: f32[2,8,32], index: 15, kind: output, shape index: {0}]   ;;  %s3455_s16 = inlined_call_operand.hbm [shape: bf16[2,4,8,8], index: 16, kind: output, shape index: {1}]   ;;  %s3456_s17 = inlined_call_operand.vmem [shape: f32[2,8,4], index: 17, kind: output, shape index: {2}]  }
   0x1   :  { %3459 = sst [smem:[#allocation23_spill]] %s3439_s0 }
   0x2   :  { %3460 = sst [smem:[#allocation24_spill]] %s3440_s1 }
   0x3   :  { %23 = vsyncpa [#allocation4], 0 }
   0x4   :  { %24 = vsyncpa [#allocation7], 0 }
   0x5   :  { %25 = vsyncpa [#allocation10], 0 }
   0x6   :  { %26 = vsyncpa [#allocation13], 0 }
   0x7   :  { %27 = vsyncpa [#allocation5], 0 }
   0x8   :  { %28 = vsyncpa [#allocation16], 0  ;;  %s2893_s24 = smov [#allocation6]   ;;  %s2894_s26 = smov [#allocation9]  }
   0x9   :  { %s51_s25 = sshll.u32 %s2893_s24, 4  ;;  %s73_s27 = sshll.u32 %s2894_s26, 4  ;;  %s52_s25 = int_to_ptr.vmem [resolvable:$true] %s51_s25  ;;  %s74_s27 = int_to_ptr.vmem [resolvable:$true] %s73_s27 }
   0xa   :  { %s2729_s28 = scalar_lea.vmem %s52_s25, 16  ;;  %s2733_s29 = scalar_lea.vmem %s52_s25, 32 }
   0xb   :  { %p2730_p0 = scmp.ne.s32.totalorder %s52_s25, %s2729_s28  ;;  %p2734_p1 = scmp.lt.s32.totalorder %s52_s25, %s52_s25 }
   0xc   :  { %p2735_p2 = scmp.lt.s32.totalorder %s2733_s29, %s2729_s28 }
   0xe   :  { %p2736_p3 = por %p2735_p2, %p2734_p1 }
  0x10   :  { %p2737_p4 = pnand %p2736_p3, %p2730_p0 }
  0x12   :  { %2740 = shalt.err (!%p2737_p4)
}
  0x13   :  { %54 = dma.hbm_to_vmem [thread:$0]  %s3443_s4, 16, %s52_s25, [#allocation7]  }
  0x14   :  { %s2749_s18 = scalar_lea.vmem %s74_s27, 16  ;;  %s2753_s19 = scalar_lea.vmem %s74_s27, 32 }
  0x15   :  { %p2750_p5 = scmp.ne.s32.totalorder %s74_s27, %s2749_s18  ;;  %p2754_p6 = scmp.lt.s32.totalorder %s74_s27, %s74_s27 }
  0x16   :  { %p2755_p7 = scmp.lt.s32.totalorder %s2753_s19, %s2749_s18 }
  0x18   :  { %p2756_p8 = por %p2755_p7, %p2754_p6 }
  0x1a   :  { %p2757_p9 = pnand %p2756_p8, %p2750_p5 }
  0x1c   :  { %2760 = shalt.err (!%p2757_p9)
}
  0x1d   :  { %76 = dma.hbm_to_vmem [thread:$0]  %s3445_s6, 16, %s74_s27, [#allocation10]  }
  0x1e   :  { %s2895_s21 = smov [#allocation3]   ;;  %s2896_s23 = smov [#allocation8]  }
  0x1f   :  { %s39_s22 = sshll.u32 %s2895_s21, 4  ;;  %s60_s24 = sshll.u32 %s2896_s23, 4  ;;  %s40_s22 = int_to_ptr.vmem [resolvable:$true] %s39_s22  ;;  %s61_s24 = int_to_ptr.vmem [resolvable:$true] %s60_s24 }
  0x20   :  { %s2769_s26 = scalar_lea.vmem %s40_s22, 16  ;;  %s2773_s4 = scalar_lea.vmem %s40_s22, 32 }
  0x21   :  { %p2770_p10 = scmp.ne.s32.totalorder %s40_s22, %s2769_s26  ;;  %p2774_p11 = scmp.lt.s32.totalorder %s40_s22, %s40_s22 }
  0x22   :  { %p2775_p12 = scmp.lt.s32.totalorder %s2773_s4, %s2769_s26 }
  0x24   :  { %p2776_p13 = por %p2775_p12, %p2774_p11 }
  0x26   :  { %p2777_p0 = pnand %p2776_p13, %p2770_p10 }
  0x28   :  { %2780 = shalt.err (!%p2777_p0)
}
  0x29   :  { %42 = dma.hbm_to_vmem [thread:$0]  %s3441_s2, 16, %s40_s22, [#allocation4]  }
  0x2a   :  { %s2789_s29 = scalar_lea.vmem %s61_s24, 256  ;;  %p2794_p2 = scmp.lt.s32.totalorder %s61_s24, %s61_s24 }
  0x2b   :  { %p2790_p1 = scmp.ne.s32.totalorder %s61_s24, %s2789_s29  ;;  %p2795_p3 = scmp.lt.s32.totalorder %s2789_s29, %s2789_s29 }
  0x2d   :  { %p2796_p4 = por %p2795_p3, %p2794_p2 }
  0x2f   :  { %p2797_p5 = pnand %p2796_p4, %p2790_p1 }
  0x31   :  { %2800 = shalt.err (!%p2797_p5)
}
  0x32   :  { %s2897_s6 = smov 64   ;;  %s2898_s27 = smov 4  }
  0x33   :  { %66 = dma.hbm_to_vmem [thread:$0]  %s3444_s5, 256, %s61_s24, [#allocation7], %s2897_s6, %s2897_s6, %s2898_s27  }
  0x34   :  { %s2899_s18 = smov [#allocation11]   ;;  %s2900_s1 = smov [#allocation12]  }
  0x35   :  { %s83_s19 = sshll.u32 %s2899_s18, 4  ;;  %s93_s2 = sshll.u32 %s2900_s1, 4  ;;  %s84_s19 = int_to_ptr.vmem [resolvable:$true] %s83_s19  ;;  %s94_s2 = int_to_ptr.vmem [resolvable:$true] %s93_s2 }
  0x36   :  { %s2809_s20 = scalar_lea.vmem %s84_s19, 16  ;;  %s2813_s21 = scalar_lea.vmem %s84_s19, 32 }
  0x37   :  { %p2810_p6 = scmp.ne.s32.totalorder %s84_s19, %s2809_s20  ;;  %p2814_p7 = scmp.lt.s32.totalorder %s84_s19, %s84_s19 }
  0x38   :  { %p2815_p8 = scmp.lt.s32.totalorder %s2813_s21, %s2809_s20 }
  0x3a   :  { %p2816_p9 = por %p2815_p8, %p2814_p7 }
  0x3c   :  { %p2817_p10 = pnand %p2816_p9, %p2810_p6 }
  0x3e   :  { %2820 = shalt.err (!%p2817_p10)
}
  0x3f   :  { %86 = dma.hbm_to_vmem [thread:$0]  %s3446_s7, 16, %s84_s19, [#allocation10]  }
  0x40   :  { %s2829_s26 = scalar_lea.vmem %s94_s2, 16  ;;  %s2833_s5 = scalar_lea.vmem %s94_s2, 32 }
  0x41   :  { %p2830_p11 = scmp.ne.s32.totalorder %s94_s2, %s2829_s26  ;;  %p2834_p12 = scmp.lt.s32.totalorder %s94_s2, %s94_s2 }
  0x42   :  { %p2835_p13 = scmp.lt.s32.totalorder %s2833_s5, %s2829_s26 }
  0x44   :  { %p2836_p0 = por %p2835_p13, %p2834_p12 }
  0x46   :  { %p2837_p1 = pnand %p2836_p0, %p2830_p11 }
  0x48   :  { %2840 = shalt.err (!%p2837_p1)
}
  0x49   :  { %96 = dma.hbm_to_vmem [thread:$0]  %s3447_s8, 16, %s94_s2, [#allocation13]  }
  0x4a   :  { %2881 = dma.done.wait [#allocation4], 16  }
  0x4b   :  { %2882 = vsyncadd [#allocation4], 4294967280 }
  0x4c   :  { %2883 = dma.done.wait [#allocation7], 272  }
  0x4d   :  { %2884 = vsyncadd [#allocation7], 4294967024 }
  0x4e   :  { %2885 = dma.done.wait [#allocation10], 32  }
  0x4f   :  { %2886 = vsyncadd [#allocation10], 4294967264 }
  0x50   :  { %2887 = dma.done.wait [#allocation13], 16  }
  0x51   :  { %2888 = vsyncadd [#allocation13], 4294967280  ;;  %v2901_v0 = vmov 0.0   ;;  %vm2902_vm0 = vmmov 0   ;;  %v2649_v1 = vld [vmem:[%s3442_s3 + $0x8] sm:$0xff]   ;;  %v2650_v2 = vld [vmem:[%s3442_s3] sm:$0xff]  }
  0x52   :  { %2412 = vmatprep.subr.bf16.mxu1 %v2901_v0  ;;  %2416 = vmatprep.mubr.msk.bf16.mxu1 %vm2902_vm0, %v2901_v0  ;;  %s3461_s30 = sld [smem:[#allocation23_spill]]  ;;  %vm157_vm1 = vcmask 261120   ;;  %v2653_v7 = vld [vmem:[%s3442_s3 + $0x8] sm:$0xff]   ;;  %v2654_v8 = vld [vmem:[%s3442_s3] sm:$0xff]   ;;  %vm202_vm2 = vcmask 519168   ;;  %vm355_vm3 = vcmask 64512  }
  0x53   :  { %2428 = vmatprep.subr.bf16.mxu0 %v2901_v0  ;;  %2432 = vmatprep.mubr.msk.bf16.mxu0 %vm2902_vm0, %v2901_v0  ;;  %s3462_s1 = sld [smem:[#allocation24_spill]]  ;;  %v2255_v11 = vld [vmem:[#allocation6] ss:$0 sm:$0xff]  ;;  %v3078_v20 = vld [vmem:[#allocation3] ss:$0 sm:$0xff]  ;;  %s2903_s3 = smov 120  }
  0x54   :  { %2413 = vmatpush3.bf16.msra.mxu1 %v2649_v1  ;;  %s2904_s4 = smov 96   ;;  %vm425_vm4 = vcmask 1043456   ;;  %s2905_s7 = smov 88   ;;  %vm415_vm5 = vcmask 60416   ;;  %vm1173_vm6 = vcmask 523264  }
  0x55   :  { %2414 = vmatprep.subr.bf16.mxu1 %v2901_v0  ;;  %s2906_s8 = smov 112   ;;  %s2907_s25 = smov 80  }
  0x56   :  { %s2908_s28 = smov 104   ;;  %s2909_s29 = smov 72  }
  0x58   :  { %v3040_v3 = vld [vmem:[%s3461_s30] sm:$0xff]  ;;  %2415 = vmatpush3.bf16.msra.mxu1 %v2650_v2  ;;  %v2259_v9 = vld [vmem:[%s3461_s30 + $0x8] sm:$0xff] }
  0x59   :  { %v2651_v4 = vld [vmem:[%s3462_s1 + $0x8] sm:$0xff]   ;;  %v2652_v5 = vld [vmem:[%s3462_s1] sm:$0xff]   ;;  %v133_v6 = vpack.c.bf16 %v3040_v3, %v3040_v3  ;;  %2420 = vmatprep.subr.bf16.mxu1 %v2901_v0  ;;  %v3070_v10 = vpack.c.bf16 %v2259_v9, %v2259_v9 }
  0x5a   :  { %2429 = vmatpush3.bf16.msra.mxu0 %v2651_v4 }
  0x5b   :  { %2430 = vmatprep.subr.bf16.mxu0 %v2901_v0  ;;  %2417 = vmatmul.mubr.msk.bf16.vlgmr.msra.gmra.mxu1 %vm157_vm1, %v133_v6 }
  0x5c   :  { %2424 = vmatprep.mubr.msk.bf16.mxu1 %vm2902_vm0, %v2901_v0  ;;  %2421 = vmatpush3.bf16.msra.mxu1 %v2653_v7 }
  0x5d   :  { %2422 = vmatprep.subr.bf16.mxu1 %v2901_v0 }
  0x5e   :  { %2431 = vmatpush3.bf16.msra.mxu0 %v2652_v5  ;;  %v591_v5 = vld [vmem:[#allocation8 + $0x4] sm:$0xf] }
  0x5f   :  { %2442 = vmatprep.subr.bf16.mxu0 %v2901_v0 }
  0x60   :  { %2423 = vmatpush3.bf16.msra.mxu1 %v2654_v8 }
  0x61   :  { %2433 = vmatmul.mubr.msk.bf16.vlgmr.msra.gmra.mxu0 %vm157_vm1, %v133_v6  ;;  %2436 = vmatprep.subr.bf16.mxu1 %v2901_v0  ;;  %v596_v6 = vsel %vm425_vm4, %v591_v5, 0 }
  0x62   :  { %2444 = vmatprep.mubr.msk.bf16.mxu0 %vm2902_vm0, %v2901_v0 }
  0x63   :  { %2425 = vmatmul.mubr.msk.bf16.vlgmr.msra.gmra.mxu1 %vm157_vm1, %v3070_v10 }
  0x64   :  { %2438 = vmatprep.mubr.msk.bf16.mxu1 %vm2902_vm0, %v2901_v0 }
 0x11b   :  { %v195_v12 = vpop.f32.mrf.mxu1 }
 0x11c   :  { %v196_v13 = vadd.f32 %v2255_v11, %v195_v12  ;;  %v470_v12 = vld [vmem:[#allocation8] sm:$0xf] }
 0x11d   :  { %v2418_v14 = vpop.f32.mrf.mxu1 }
 0x11e   :  { %v201_v15 = vpack.c.bf16 %v196_v13, %v196_v13 }
 0x11f   :  { %v198_v17 = vpop.f32.mrf.mxu1 }
 0x120   :  { %203 = vst.msk [vmem:[#allocation2] sm:$0xf] %vm202_vm2, %v201_v15  ;;  %v642_v15 = vsel %vm425_vm4, %v470_v12, 0 }
 0x121   :  { %v341_v16 = vpop.f32.mrf.mxu0  ;;  %v2419_v19 = vpop.f32.mrf.mxu1 }
 0x122   :  { %v3081_v23 = vadd.f32 %v3078_v20, %v341_v16 }
 0x123   :  { %v2434_v18 = vpop.f32.mrf.mxu0  ;;  %v267_v28 = vpop.f32.mrf.mxu1 }
 0x124   :  { %v3086_v27 = vpack.c.bf16 %v3081_v23, %v3081_v23  ;;  %v268_v29 = vadd.f32 %v2255_v11, %v267_v28 }
 0x125   :  { %v344_v21 = vpop.f32.mrf.mxu0  ;;  %v2426_v30 = vpop.f32.mrf.mxu1 }
 0x126   :  { %v273_v31 = vpack.c.bf16 %v268_v29, %v268_v29 }
 0x127   :  { %v2435_v22 = vpop.f32.mrf.mxu0  ;;  %v354_v24 = vld [vmem:[#allocation2] sm:$0xf]  ;;  %v270_v32 = vpop.f32.mrf.mxu1 }
 0x128   :  { %v2655_v25 = vld [vmem:[#allocation2] ss:$0 sps:$4 sm:$0xff]   ;;  %v360_v26 = vsel %vm355_vm3, %v354_v24, 0  ;;  %275 = vst.msk [vmem:[#allocation2 + $0x4] sm:$0xf] %vm202_vm2, %v273_v31  ;;  %v2269_v49 = vcombine.low %v354_v24, %v354_v24 }
 0x129   :  { %2437 = vmatpush3.bf16.xpose.msra.mxu1 %v360_v26  ;;  %478 = vrot.lane.b32.xlu0 %v2655_v25, %s2903_s3  ;;  %v2427_v33 = vpop.f32.mrf.mxu1  ;;  %v3110_v62 = vld [vmem:[#allocation2] ss:$0 sps:$4 sm:$0xff]  }
 0x12a   :  { %2448 = vmatprep.subr.bf16.mxu1 %v2901_v0 }
 0x12d   :  { %473 = vrot.lane.b32.xlu0 %v3086_v27, %s2903_s3 }
 0x130   :  { %2439 = vmatmul.mubr.msk.bf16.vlgmr.msra.gmra.mxu1 %vm355_vm3, %v3086_v27 }
 0x131   :  { %2450 = vmatprep.mubr.msk.bf16.mxu1 %vm2902_vm0, %v2901_v0 }
 0x19b   :  { %v479_v34 = vpop.permute.xlu0 %478 }
 0x19c   :  { %v484_v35 = vsel %vm355_vm3, %v479_v34, 0 }
 0x19d   :  { %2449 = vmatpush3.bf16.xpose.msra.mxu1 %v484_v35 }
 0x19e   :  { %2460 = vmatprep.subr.bf16.mxu1 %v2901_v0 }
 0x19f   :  { %v474_v36 = vpop.permute.xlu0 %473 }
 0x1a4   :  { %2451 = vmatmul.mubr.msk.bf16.vlgmr.msra.gmra.mxu1 %vm355_vm3, %v474_v36 }
 0x1a5   :  { %2462 = vmatprep.mubr.msk.bf16.mxu1 %vm2902_vm0, %v2901_v0  ;;  %2461 = vmatpush3.bf16.msra.mxu1 %v596_v6 }
 0x1a6   :  { %2472 = vmatprep.subr.bf16.mxu1 %v2901_v0 }
 0x1f0   :  { %v396_v37 = vpop.f32.mrf.mxu1 }
 0x1f1   :  { %v402_v38 = vmul.f32 0.35355338, %v396_v37 }
 0x1f2   :  { %v2440_v39 = vpop.f32.mrf.mxu1 }
 0x1f3   :  { %v403_v40 = vsel %vm355_vm3, %v402_v38, -inf }
 0x1f4   :  { %404 = vmax.xlane.f32.xlu1 %v403_v40  ;;  %v399_v41 = vpop.f32.mrf.mxu1 }
 0x1f6   :  { %v2441_v42 = vpop.f32.mrf.mxu1 }
 0x264   :  { %v520_v43 = vpop.f32.mrf.mxu1 }
 0x265   :  { %v526_v44 = vmul.f32 0.35355338, %v520_v43 }
 0x266   :  { %v2452_v45 = vpop.f32.mrf.mxu1 }
 0x267   :  { %v527_v46 = vsel %vm355_vm3, %v526_v44, -inf }
 0x268   :  { %528 = vmax.xlane.f32.xlu1 %v527_v46  ;;  %v523_v47 = vpop.f32.mrf.mxu1  ;;  %v2657_v46 = vld [vmem:[#allocation2] ss:$0 sps:$4 sm:$0xff]  }
 0x26a   :  { %v2453_v48 = vpop.f32.mrf.mxu1 }
 0x279   :  { %420 = vrot.lane.b32.xlu1 %v2269_v49, %s2904_s4 }
 0x27d   :  { %v405_v50 = vpop.xlane.xlu1 %404 }
 0x27e   :  { %v406_v51 = vsub.f32 %v402_v38, %v405_v50 }
 0x280   :  { %v407_v52 = vmul.f32 1.442695, %v406_v51 }
 0x282   :  { %2676 = vpow2.f32 %v407_v52 }
 0x28f   :  { %v2677_v53 = vpop.eup %2676 }
 0x290   :  { %v409_v54 = vsel %vm355_vm3, %v2677_v53, 0.0 }
 0x291   :  { %410 = vadd.xlane.f32.xlu0 %v409_v54 }
 0x2f1   :  { %v529_v55 = vpop.xlane.xlu1 %528 }
 0x2f2   :  { %v530_v56 = vsub.f32 %v526_v44, %v529_v55 }
 0x2f4   :  { %v531_v57 = vmul.f32 1.442695, %v530_v56 }
 0x2f5   :  { %v421_v58 = vpop.permute.xlu1 %420 }
 0x2f6   :  { %2678 = vpow2.f32 %v531_v57  ;;  %v427_v59 = vsel %vm425_vm4, %v421_v58, 0 }
 0x2f7   :  { %2443 = vmatpush3.bf16.msra.mxu0 %v427_v59 }
 0x2f8   :  { %2454 = vmatprep.subr.bf16.mxu0 %v2901_v0 }
 0x303   :  { %v2679_v60 = vpop.eup %2678 }
 0x304   :  { %v533_v61 = vsel %vm355_vm3, %v2679_v60, 0.0 }
 0x305   :  { %534 = vadd.xlane.f32.xlu1 %v533_v61 }
 0x316   :  { %541 = vrot.lane.b32.xlu1 %v2655_v25, %s2905_s7 }
 0x31a   :  { %v411_v63 = vpop.xlane.xlu0 %410  ;;  %690 = vrot.lane.b32.xlu1 %v3110_v62, %s2906_s8 }
 0x31b   :  { %2680 = vrcp.f32 %v411_v63 }
 0x31e   :  { %685 = vrot.lane.b32.xlu1 %v3086_v27, %s2906_s8 }
 0x328   :  { %v2681_v1 = vpop.eup %2680 }
 0x329   :  { %v413_v2 = vmul.f32 %v2681_v1, %v2677_v53 }
 0x32b   :  { %v414_v4 = vpack.c.bf16 %v413_v2, %v413_v2 }
 0x32d   :  { %416 = vst.msk [vmem:[#allocation15] sm:$0xf] %vm415_vm5, %v414_v4  ;;  %2445 = vmatmul.mubr.msk.bf16.vlgmr.msra.gmra.mxu0 %vm355_vm3, %v414_v4 }
 0x32e   :  { %2456 = vmatprep.mubr.msk.bf16.mxu0 %vm2902_vm0, %v2901_v0 }
 0x38e   :  { %v535_v7 = vpop.xlane.xlu1 %534 }
 0x38f   :  { %2682 = vrcp.f32 %v535_v7 }
 0x392   :  { %v542_v8 = vpop.permute.xlu1 %541 }
 0x393   :  { %v547_v9 = vsel %vm425_vm4, %v542_v8, 0 }
 0x394   :  { %2455 = vmatpush3.bf16.msra.mxu0 %v547_v9 }
 0x395   :  { %2466 = vmatprep.subr.bf16.mxu0 %v2901_v0 }
 0x396   :  { %v691_v22 = vpop.permute.xlu1 %690 }
 0x397   :  { %v696_v28 = vsel %vm355_vm3, %v691_v22, 0  ;;  %v970_v22 = vld [vmem:[#allocation8 + $0xc] sm:$0xf] }
 0x39a   :  { %v686_v31 = vpop.permute.xlu1 %685 }
 0x39c   :  { %v2683_v11 = vpop.eup %2682 }
 0x39d   :  { %v537_v13 = vmul.f32 %v2683_v11, %v2679_v60  ;;  %v803_v60 = vld [vmem:[#allocation8 + $0x8] sm:$0xf] }
 0x39e   :  { %v808_v61 = vsel %vm425_vm4, %v803_v60, 0  ;;  %v3204_v60 = vld [vmem:[#allocation12] ss:$0 sm:$0xff] }
 0x39f   :  { %v538_v14 = vpack.c.bf16 %v537_v13, %v537_v13 }
 0x3a1   :  { %540 = vst.msk [vmem:[#allocation15 + $0x4] sm:$0xf] %vm415_vm5, %v538_v14  ;;  %2457 = vmatmul.mubr.msk.bf16.vlgmr.msra.gmra.mxu0 %vm355_vm3, %v538_v14 }
 0x3a2   :  { %2467 = vmatpush3.bf16.msra.mxu0 %v642_v15  ;;  %2468 = vmatprep.mubr.msk.bf16.mxu0 %vm2902_vm0, %v2901_v0 }
 0x3a3   :  { %2478 = vmatprep.subr.bf16.mxu0 %v2901_v0 }
 0x3ed   :  { %v463_v16 = vpop.f32.mrf.mxu0 }
 0x3ee   :  { %v469_v17 = vpack.c.bf16 %v463_v16, %v463_v16 }
 0x3ef   :  { %v2446_v18 = vpop.f32.mrf.mxu0 }
 0x3f0   :  { %2469 = vmatmul.mubr.msk.bf16.vlgmr.msra.gmra.mxu0 %vm355_vm3, %v469_v17 }
 0x3f1   :  { %v466_v19 = vpop.f32.mrf.mxu0  ;;  %2480 = vmatprep.mubr.msk.bf16.mxu0 %vm2902_vm0, %v2901_v0 }
 0x3f3   :  { %v2447_v21 = vpop.f32.mrf.mxu0 }
 0x461   :  { %v583_v24 = vpop.f32.mrf.mxu0 }
 0x462   :  { %v589_v25 = vpack.c.bf16 %v583_v24, %v583_v24  ;;  %v975_v24 = vsel %vm425_vm4, %v970_v22, 0 }
 0x463   :  { %v2458_v26 = vpop.f32.mrf.mxu0 }
 0x464   :  { %2463 = vmatmul.mubr.msk.bf16.vlgmr.msra.gmra.mxu1 %vm355_vm3, %v589_v25 }
 0x465   :  { %2473 = vmatpush3.bf16.xpose.msra.mxu1 %v696_v28  ;;  %v586_v29 = vpop.f32.mrf.mxu0  ;;  %2474 = vmatprep.mubr.msk.bf16.mxu1 %vm2902_vm0, %v2901_v0 }
 0x466   :  { %2484 = vmatprep.subr.bf16.mxu1 %v2901_v0 }
 0x467   :  { %v2459_v30 = vpop.f32.mrf.mxu0 }
 0x46c   :  { %2475 = vmatmul.mubr.msk.bf16.vlgmr.msra.gmra.mxu1 %vm355_vm3, %v686_v31 }
 0x46d   :  { %2486 = vmatprep.mubr.msk.bf16.mxu1 %vm2902_vm0, %v2901_v0  ;;  %2485 = vmatpush3.bf16.msra.mxu1 %v808_v61 }
 0x46e   :  { %2496 = vmatprep.subr.bf16.mxu1 %v2901_v0 }
 0x4b0   :  { %v3141_v32 = vpop.f32.mrf.mxu0 }
 0x4b2   :  { %v2470_v33 = vpop.f32.mrf.mxu0 }
 0x4b4   :  { %v681_v34 = vpop.f32.mrf.mxu0 }
 0x4b6   :  { %v2471_v35 = vpop.f32.mrf.mxu0 }
 0x524   :  { %v3143_v36 = vpop.f32.mrf.mxu1 }
 0x525   :  { %v679_v17 = vadd.f32 %v3141_v32, %v3143_v36 }
 0x526   :  { %v2464_v37 = vpop.f32.mrf.mxu1 }
 0x528   :  { %v635_v38 = vpop.f32.mrf.mxu1 }
 0x52a   :  { %v2465_v39 = vpop.f32.mrf.mxu1 }
 0x52c   :  { %v732_v40 = vpop.f32.mrf.mxu1 }
 0x52d   :  { %v738_v41 = vmul.f32 0.35355338, %v732_v40  ;;  %v3184_v40 = vld [vmem:[#allocation9] ss:$0 sm:$0xff] }
 0x52e   :  { %v2476_v42 = vpop.f32.mrf.mxu1 }
 0x52f   :  { %v739_v43 = vsel %vm355_vm3, %v738_v41, -inf }
 0x530   :  { %740 = vmax.xlane.f32.xlu0 %v739_v43  ;;  %v735_v44 = vpop.f32.mrf.mxu1 }
 0x532   :  { %v2477_v45 = vpop.f32.mrf.mxu1 }
 0x546   :  { %753 = vrot.lane.b32.xlu0 %v3110_v62, %s2907_s25 }
 0x54a   :  { %857 = vrot.lane.b32.xlu0 %v2657_v46, %s2908_s28 }
 0x54e   :  { %852 = vrot.lane.b32.xlu0 %v3086_v27, %s2908_s28 }
 0x5b9   :  { %v741_v47 = vpop.xlane.xlu0 %740 }
 0x5ba   :  { %v742_v48 = vsub.f32 %v738_v41, %v741_v47 }
 0x5bc   :  { %v743_v49 = vmul.f32 1.442695, %v742_v48 }
 0x5bd   :  { %v754_v50 = vpop.permute.xlu0 %753 }
 0x5be   :  { %2684 = vpow2.f32 %v743_v49  ;;  %v759_v51 = vsel %vm425_vm4, %v754_v50, 0 }
 0x5bf   :  { %2479 = vmatpush3.bf16.msra.mxu0 %v759_v51 }
 0x5c0   :  { %2490 = vmatprep.subr.bf16.mxu0 %v2901_v0 }
 0x5c1   :  { %v858_v57 = vpop.permute.xlu0 %857 }
 0x5c2   :  { %v863_v58 = vsel %vm355_vm3, %v858_v57, 0 }
 0x5c5   :  { %v853_v59 = vpop.permute.xlu0 %852 }
 0x5cb   :  { %v2685_v52 = vpop.eup %2684 }
 0x5cc   :  { %v745_v53 = vsel %vm355_vm3, %v2685_v52, 0.0 }
 0x5cd   :  { %746 = vadd.xlane.f32.xlu1 %v745_v53  ;;  %v3190_v53 = vld [vmem:[#allocation2 + $0x4] ss:$0 sps:$4 sm:$0xff]  }
 0x656   :  { %v747_v54 = vpop.xlane.xlu1 %746 }
 0x657   :  { %2686 = vrcp.f32 %v747_v54  ;;  %v2660_v54 = vld [vmem:[%s3448_s9] sm:$0xff]  }
 0x664   :  { %v2687_v55 = vpop.eup %2686 }
 0x665   :  { %v749_v56 = vmul.f32 %v2687_v55, %v2685_v52 }
 0x667   :  { %v750_v27 = vpack.c.bf16 %v749_v56, %v749_v56 }
 0x669   :  { %752 = vst.msk [vmem:[#allocation15 + $0x8] sm:$0xf] %vm415_vm5, %v750_v27  ;;  %2481 = vmatmul.mubr.msk.bf16.vlgmr.msra.gmra.mxu0 %vm355_vm3, %v750_v27 }
 0x66a   :  { %2491 = vmatpush3.bf16.xpose.msra.mxu0 %v863_v58  ;;  %2492 = vmatprep.mubr.msk.bf16.mxu0 %vm2902_vm0, %v2901_v0  ;;  %v3202_v58 = vld [vmem:[#allocation11] ss:$0 sm:$0xff] }
 0x66b   :  { %2502 = vmatprep.subr.bf16.mxu0 %v2901_v0 }
 0x671   :  { %2493 = vmatmul.mubr.msk.bf16.vlgmr.msra.gmra.mxu0 %vm355_vm3, %v853_v59 }
 0x672   :  { %2504 = vmatprep.mubr.msk.bf16.mxu0 %vm2902_vm0, %v2901_v0  ;;  %2503 = vmatpush3.bf16.msra.mxu0 %v975_v24 }
 0x673   :  { %2516 = vmatprep.subr.bf16.mxu0 %v2901_v0 }
 0x729   :  { %v795_v62 = vpop.f32.mrf.mxu0 }
 0x72a   :  { %v801_v63 = vpack.c.bf16 %v795_v62, %v795_v62 }
 0x72b   :  { %v2482_v1 = vpop.f32.mrf.mxu0 }
 0x72c   :  { %2487 = vmatmul.mubr.msk.bf16.vlgmr.msra.gmra.mxu1 %vm355_vm3, %v801_v63  ;;  %v2661_v63 = vld [vmem:[%s3462_s1 + $0x8] sm:$0xff]  }
 0x72d   :  { %v798_v2 = vpop.f32.mrf.mxu0  ;;  %2498 = vmatprep.mubr.msk.bf16.mxu1 %vm2902_vm0, %v2901_v0 }
 0x72e   :  { %v2662_v2 = vld [vmem:[%s3462_s1] sm:$0xff]  }
 0x72f   :  { %v2483_v4 = vpop.f32.mrf.mxu0 }
 0x730   :  { %v3222_v4 = vld [vmem:[#allocation2 + $0x4] sm:$0xf] }
 0x731   :  { %v899_v5 = vpop.f32.mrf.mxu0 }
 0x732   :  { %v905_v6 = vmul.f32 0.35355338, %v899_v5  ;;  %v1331_v5 = vsel %vm355_vm3, %v3222_v4, 0 }
 0x733   :  { %v2494_v7 = vpop.f32.mrf.mxu0 }
 0x734   :  { %v906_v8 = vsel %vm355_vm3, %v905_v6, -inf  ;;  %v2664_v7 = vld [vmem:[%s3450_s11 + $0x10] sm:$0xff]  }
 0x735   :  { %907 = vmax.xlane.f32.xlu0 %v906_v8  ;;  %v902_v9 = vpop.f32.mrf.mxu0  ;;  %v2666_v8 = vld [vmem:[%s3450_s11] sm:$0xff]  }
 0x736   :  { %v3251_v9 = vld [vmem:[%s3449_s10] ss:$0 sm:$0xff] }
 0x737   :  { %v2495_v11 = vpop.f32.mrf.mxu0 }
 0x7be   :  { %v908_v12 = vpop.xlane.xlu0 %907 }
 0x7bf   :  { %v909_v13 = vsub.f32 %v905_v6, %v908_v12  ;;  %v2663_v6 = vld [vmem:[%s3450_s11 + $0x18] sm:$0xff]  }
 0x7c1   :  { %v910_v14 = vmul.f32 1.442695, %v909_v13 }
 0x7c3   :  { %2688 = vpow2.f32 %v910_v14 }
 0x7d0   :  { %v2689_v15 = vpop.eup %2688 }
 0x7d1   :  { %v912_v16 = vsel %vm355_vm3, %v2689_v15, 0.0 }
 0x7d2   :  { %913 = vadd.xlane.f32.xlu1 %v912_v16 }
 0x7e3   :  { %920 = vrot.lane.b32.xlu1 %v2657_v46, %s2909_s29 }
 0x7ec   :  { %v844_v18 = vpop.f32.mrf.mxu1 }
 0x7ed   :  { %v850_v19 = vadd.f32 %v844_v18, %v679_v17 }
 0x7ee   :  { %v2488_v21 = vpop.f32.mrf.mxu1 }
 0x7f0   :  { %v847_v25 = vpop.f32.mrf.mxu1 }
 0x7f2   :  { %v2489_v26 = vpop.f32.mrf.mxu1 }
 0x85b   :  { %v914_v28 = vpop.xlane.xlu1 %913 }
 0x85c   :  { %2690 = vrcp.f32 %v914_v28 }
 0x85f   :  { %v921_v29 = vpop.permute.xlu1 %920 }
 0x860   :  { %v926_v30 = vsel %vm425_vm4, %v921_v29, 0 }
 0x861   :  { %2497 = vmatpush3.bf16.msra.mxu1 %v926_v30 }
 0x862   :  { %2508 = vmatprep.subr.bf16.mxu1 %v2901_v0 }
 0x869   :  { %v2691_v31 = vpop.eup %2690 }
 0x86a   :  { %v916_v32 = vmul.f32 %v2691_v31, %v2689_v15 }
 0x86c   :  { %v917_v33 = vpack.c.bf16 %v916_v32, %v916_v32 }
 0x86e   :  { %919 = vst.msk [vmem:[#allocation15 + $0xc] sm:$0xf] %vm415_vm5, %v917_v33  ;;  %2499 = vmatmul.mubr.msk.bf16.vlgmr.msra.gmra.mxu1 %vm355_vm3, %v917_v33 }
 0x86f   :  { %2512 = vmatprep.mubr.msk.bf16.mxu1 %vm2902_vm0, %v2901_v0 }
 0x92e   :  { %v962_v34 = vpop.f32.mrf.mxu1 }
 0x92f   :  { %v968_v35 = vpack.c.bf16 %v962_v34, %v962_v34 }
 0x930   :  { %v2500_v36 = vpop.f32.mrf.mxu1 }
 0x931   :  { %2505 = vmatmul.mubr.msk.bf16.vlgmr.msra.gmra.mxu0 %vm355_vm3, %v968_v35 }
 0x932   :  { %v965_v37 = vpop.f32.mrf.mxu1  ;;  %2524 = vmatprep.mubr.msk.bf16.mxu0 %vm2902_vm0, %v2901_v0  ;;  %2517 = vmatpush3.bf16.msra.mxu0 %v2663_v6 }
 0x933   :  { %2518 = vmatprep.subr.bf16.mxu0 %v2901_v0 }
 0x934   :  { %v2501_v38 = vpop.f32.mrf.mxu1 }
 0x936   :  { %2519 = vmatpush3.bf16.msra.mxu0 %v2664_v7 }
 0x937   :  { %2520 = vmatprep.subr.bf16.mxu0 %v2901_v0 }
 0x9f1   :  { %v1011_v39 = vpop.f32.mrf.mxu0 }
 0x9f2   :  { %v1017_v41 = vadd.f32 %v1011_v39, %v850_v19 }
 0x9f3   :  { %v2506_v42 = vpop.f32.mrf.mxu0 }
 0x9f4   :  { %v1025_v43 = vadd.f32 %v3184_v40, %v1017_v41 }
 0x9f5   :  { %v1014_v44 = vpop.f32.mrf.mxu0 }
 0x9f6   :  { %v1026_v45 = vadd.f32 %v1025_v43, %v3040_v3  ;;  %v2659_v3 = vld [vmem:[%s3448_s9 + $0x8] sm:$0xff]  }
 0x9f7   :  { %v2507_v46 = vpop.f32.mrf.mxu0  ;;  %2509 = vmatpush3.bf16.msra.mxu1 %v2659_v3 }
 0x9f8   :  { %v1027_v47 = vsel %vm157_vm1, %v1026_v45, 0.0  ;;  %2510 = vmatprep.subr.bf16.mxu1 %v2901_v0 }
 0x9f9   :  { %1028 = vadd.xlane.f32.xlu1 %v1027_v47  ;;  %v3278_v47 = vld [vmem:[#allocation2 + $0x4] ss:$0 sps:$4 sm:$0xff]  }
 0x9fb   :  { %2511 = vmatpush3.bf16.msra.mxu1 %v2660_v54 }
 0x9fc   :  { %2528 = vmatprep.subr.bf16.mxu1 %v2901_v0 }
 0xa82   :  { %v1029_v48 = vpop.xlane.xlu1 %1028 }
 0xa83   :  { %v1031_v49 = vmul.f32 0.03125, %v1029_v48 }
 0xa85   :  { %v1032_v50 = vsub.f32 %v1026_v45, %v1031_v49 }
 0xa87   :  { %v1033_v51 = vmul.f32 %v1032_v50, %v1032_v50 }
 0xa89   :  { %v1034_v52 = vsel %vm157_vm1, %v1033_v51, 0.0 }
 0xa8a   :  { %1035 = vadd.xlane.f32.xlu0 %v1034_v52 }
 0xaa0   :  { %1448 = vrot.lane.b32.xlu0 %v3190_v53, %s2903_s3 }
 0xb13   :  { %v1036_v55 = vpop.xlane.xlu0 %1035 }
 0xb14   :  { %v1037_v56 = vmul.f32 0.03125, %v1036_v55  ;;  %v2306_v55 = vcombine.low %v3222_v4, %v3222_v4 }
 0xb16   :  { %v1038_v57 = vadd.f32 1e-05, %v1037_v56 }
 0xb17   :  { %v1449_v24 = vpop.permute.xlu0 %1448 }
 0xb18   :  { %2692 = vrsqrt.f32 %v1038_v57  ;;  %v1454_v30 = vsel %vm355_vm3, %v1449_v24, 0 }
 0xb25   :  { %v2693_v27 = vpop.eup %2692 }
 0xb26   :  { %v1040_v59 = vmul.f32 %v2693_v27, %v1032_v50 }
 0xb28   :  { %v1048_v61 = vmul.f32 %v3202_v58, %v1040_v59 }
 0xb2a   :  { %v3208_v62 = vadd.f32 %v3204_v60, %v1048_v61 }
 0xb2c   :  { %v1057_v1 = vpack.c.bf16 %v3208_v62, %v3208_v62 }
 0xb2e   :  { %2513 = vmatmul.mubr.msk.bf16.vlgmr.msra.gmra.mxu1 %vm157_vm1, %v1057_v1 }
 0xb2f   :  { %2529 = vmatpush3.bf16.msra.mxu1 %v2661_v63  ;;  %2532 = vmatprep.mubr.msk.bf16.mxu1 %vm2902_vm0, %v2901_v0 }
 0xb30   :  { %2530 = vmatprep.subr.bf16.mxu1 %v2901_v0 }
 0xb33   :  { %2531 = vmatpush3.bf16.msra.mxu1 %v2662_v2 }
 0xb34   :  { %2536 = vmatprep.subr.bf16.mxu1 %v2901_v0 }
 0xb36   :  { %2533 = vmatmul.mubr.msk.bf16.vlgmr.msra.gmra.mxu1 %vm157_vm1, %v3070_v10  ;;  %v2665_v10 = vld [vmem:[%s3450_s11 + $0x8] sm:$0xff]  }
 0xb37   :  { %2537 = vmatpush3.bf16.xpose.msra.mxu1 %v1331_v5  ;;  %2538 = vmatprep.mubr.msk.bf16.mxu1 %vm2902_vm0, %v2901_v0 }
 0xb38   :  { %2548 = vmatprep.subr.bf16.mxu1 %v2901_v0  ;;  %2521 = vmatpush3.bf16.msra.mxu0 %v2665_v10 }
 0xb39   :  { %2522 = vmatprep.subr.bf16.mxu0 %v2901_v0 }
 0xb3c   :  { %2523 = vmatpush3.bf16.msra.mxu0 %v2666_v8 }
 0xb3d   :  { %2542 = vmatprep.subr.bf16.mxu0 %v2901_v0 }
 0xbee   :  { %v1118_v11 = vpop.f32.mrf.mxu1 }
 0xbef   :  { %v1119_v12 = vadd.f32 %v3251_v9, %v1118_v11 }
 0xbf0   :  { %v2514_v13 = vpop.f32.mrf.mxu1 }
 0xbf1   :  { %v1125_v14 = vmul.f32 0.044715, %v1119_v12  ;;  %v1124_v32 = vmul.f32 0.5, %v1119_v12  ;;  %v1560_v13 = vld [vmem:[#allocation8 + $0x4] sm:$0xf] }
 0xbf2   :  { %v1121_v15 = vpop.f32.mrf.mxu1 }
 0xbf3   :  { %v1126_v16 = vmul.f32 %v1125_v14, %v1119_v12  ;;  %v1565_v14 = vsel %vm425_vm4, %v1560_v13, 0 }
 0xbf4   :  { %v2515_v17 = vpop.f32.mrf.mxu1 }
 0xbf5   :  { %v1127_v18 = vmul.f32 %v1126_v16, %v1119_v12 }
 0xbf6   :  { %v1312_v19 = vpop.f32.mrf.mxu1 }
 0xbf7   :  { %v1128_v21 = vadd.f32 %v1127_v18, %v1119_v12  ;;  %v3255_v22 = vadd.f32 %v3078_v20, %v1312_v19  ;;  %v1440_v18 = vld [vmem:[#allocation8] sm:$0xf] }
 0xbf8   :  { %v2534_v25 = vpop.f32.mrf.mxu1  ;;  %v1611_v24 = vsel %vm425_vm4, %v1440_v18, 0 }
 0xbf9   :  { %v1129_v26 = vmul.f32 0.7978846, %v1128_v21  ;;  %v3259_v28 = vpack.c.bf16 %v3255_v22, %v3255_v22 }
 0xbfa   :  { %v1315_v29 = vpop.f32.mrf.mxu1 }
 0xbfb   :  { %2694 = vtanh.f32 %v1129_v26  ;;  %1443 = vrot.lane.b32.xlu0 %v3259_v28, %s2903_s3  ;;  %2539 = vmatmul.mubr.msk.bf16.vlgmr.msra.gmra.mxu1 %vm355_vm3, %v3259_v28 }
 0xbfc   :  { %2549 = vmatpush3.bf16.xpose.msra.mxu1 %v1454_v30  ;;  %v2535_v20 = vpop.f32.mrf.mxu1  ;;  %2550 = vmatprep.mubr.msk.bf16.mxu1 %vm2902_vm0, %v2901_v0 }
 0xbfd   :  { %2560 = vmatprep.subr.bf16.mxu1 %v2901_v0 }
 0xc08   :  { %v2695_v31 = vpop.eup %2694 }
 0xc09   :  { %v1131_v33 = vadd.f32 1.0, %v2695_v31 }
 0xc0b   :  { %v1132_v34 = vmul.f32 %v1131_v33, %v1124_v32 }
 0xc0d   :  { %v1133_v35 = vpack.c.bf16 %v1132_v34, %v1132_v34 }
 0xc0f   :  { %2525 = vmatmul.mubr.msk.bf16.vlgmr.msra.gmra.mxu0 %vm1173_vm6, %v1133_v35 }
 0xc10   :  { %2544 = vmatprep.mubr.msk.bf16.mxu0 %vm2902_vm0, %v2901_v0 }
 0xc6d   :  { %v1444_v36 = vpop.permute.xlu0 %1443 }
 0xc6e   :  { %2551 = vmatmul.mubr.msk.bf16.vlgmr.msra.gmra.mxu1 %vm355_vm3, %v1444_v36 }
 0xc6f   :  { %2562 = vmatprep.mubr.msk.bf16.mxu1 %vm2902_vm0, %v2901_v0  ;;  %2561 = vmatpush3.bf16.msra.mxu1 %v1565_v14 }
 0xc70   :  { %2572 = vmatprep.subr.bf16.mxu1 %v2901_v0 }
 0xcbb   :  { %v1367_v37 = vpop.f32.mrf.mxu1 }
 0xcbc   :  { %v1373_v38 = vmul.f32 0.35355338, %v1367_v37 }
 0xcbd   :  { %v2540_v39 = vpop.f32.mrf.mxu1 }
 0xcbe   :  { %v1374_v41 = vsel %vm355_vm3, %v1373_v38, -inf }
 0xcbf   :  { %1375 = vmax.xlane.f32.xlu0 %v1374_v41  ;;  %v1370_v42 = vpop.f32.mrf.mxu1 }
 0xcc1   :  { %v2541_v43 = vpop.f32.mrf.mxu1 }
 0xccf   :  { %v3276_v44 = vpop.f32.mrf.mxu0 }
 0xcd1   :  { %v2526_v45 = vpop.f32.mrf.mxu0 }
 0xcd3   :  { %v1214_v46 = vpop.f32.mrf.mxu0 }
 0xcd5   :  { %v2527_v48 = vpop.f32.mrf.mxu0  ;;  %1659 = vrot.lane.b32.xlu0 %v3278_v47, %s2906_s8 }
 0xd2e   :  { %v1490_v49 = vpop.f32.mrf.mxu1 }
 0xd2f   :  { %v1496_v50 = vmul.f32 0.35355338, %v1490_v49 }
 0xd30   :  { %v2552_v51 = vpop.f32.mrf.mxu1 }
 0xd31   :  { %v1497_v52 = vsel %vm355_vm3, %v1496_v50, -inf }
 0xd32   :  { %1498 = vmax.xlane.f32.xlu1 %v1497_v52  ;;  %v1493_v3 = vpop.f32.mrf.mxu1 }
 0xd34   :  { %v2553_v54 = vpop.f32.mrf.mxu1 }
 0xd43   :  { %1391 = vrot.lane.b32.xlu1 %v2306_v55, %s2904_s4 }
 0xd48   :  { %v1376_v56 = vpop.xlane.xlu0 %1375 }
 0xd49   :  { %v1377_v57 = vsub.f32 %v1373_v38, %v1376_v56 }
 0xd4b   :  { %v1378_v27 = vmul.f32 1.442695, %v1377_v57 }
 0xd4c   :  { %v1660_v31 = vpop.permute.xlu0 %1659 }
 0xd4d   :  { %2696 = vpow2.f32 %v1378_v27  ;;  %v1665_v35 = vsel %vm355_vm3, %v1660_v31, 0 }
 0xd5a   :  { %v2697_v59 = vpop.eup %2696 }
 0xd5b   :  { %v1380_v61 = vsel %vm355_vm3, %v2697_v59, 0.0 }
 0xd67   :  { %1381 = vadd.xlane.f32.xlu1 %v1380_v61 }
 0xdbb   :  { %v1499_v63 = vpop.xlane.xlu1 %1498 }
 0xdbc   :  { %v1500_v1 = vsub.f32 %v1496_v50, %v1499_v63 }
 0xdbe   :  { %v1501_v2 = vmul.f32 1.442695, %v1500_v1 }
 0xdbf   :  { %v1392_v5 = vpop.permute.xlu1 %1391 }
 0xdc0   :  { %2698 = vpow2.f32 %v1501_v2  ;;  %v1397_v6 = vsel %vm425_vm4, %v1392_v5, 0  ;;  %v2669_v2 = vld [vmem:[#allocation2 + $0x4] ss:$0 sps:$4 sm:$0xff]  }
 0xdc1   :  { %2543 = vmatpush3.bf16.msra.mxu0 %v1397_v6 }
 0xdc2   :  { %2554 = vmatprep.subr.bf16.mxu0 %v2901_v0 }
 0xdcd   :  { %v2699_v4 = vpop.eup %2698 }
 0xdce   :  { %v1503_v7 = vsel %vm355_vm3, %v2699_v4, 0.0 }
 0xdcf   :  { %1504 = vadd.xlane.f32.xlu1 %v1503_v7 }
 0xde0   :  { %1511 = vrot.lane.b32.xlu1 %v3190_v53, %s2905_s7 }
 0xde4   :  { %1654 = vrot.lane.b32.xlu1 %v3259_v28, %s2906_s8 }
 0xdf0   :  { %v1382_v10 = vpop.xlane.xlu1 %1381 }
 0xdf1   :  { %2700 = vrcp.f32 %v1382_v10 }
 0xdfe   :  { %v2701_v8 = vpop.eup %2700 }
 0xdff   :  { %v1384_v11 = vmul.f32 %v2701_v8, %v2697_v59  ;;  %v1771_v8 = vld [vmem:[#allocation8 + $0x8] sm:$0xf] }
 0xe01   :  { %v1385_v12 = vpack.c.bf16 %v1384_v11, %v1384_v11  ;;  %v1776_v11 = vsel %vm425_vm4, %v1771_v8, 0  ;;  %v2671_v8 = vld [vmem:[%s3448_s9] sm:$0xff]  }
 0xe03   :  { %1387 = vst.msk [vmem:[#allocation15 + $0x10] sm:$0xf] %vm415_vm5, %v1385_v12  ;;  %2545 = vmatmul.mubr.msk.bf16.vlgmr.msra.gmra.mxu0 %vm355_vm3, %v1385_v12 }
 0xe04   :  { %2556 = vmatprep.mubr.msk.bf16.mxu0 %vm2902_vm0, %v2901_v0 }
 0xe58   :  { %v1505_v53 = vpop.xlane.xlu1 %1504 }
 0xe59   :  { %2702 = vrcp.f32 %v1505_v53 }
 0xe5c   :  { %v1512_v15 = vpop.permute.xlu1 %1511 }
 0xe5d   :  { %v1517_v16 = vsel %vm425_vm4, %v1512_v15, 0 }
 0xe5e   :  { %2555 = vmatpush3.bf16.msra.mxu0 %v1517_v16 }
 0xe5f   :  { %2566 = vmatprep.subr.bf16.mxu0 %v2901_v0 }
 0xe60   :  { %v1655_v38 = vpop.permute.xlu1 %1654 }
 0xe66   :  { %v2703_v17 = vpop.eup %2702 }
 0xe67   :  { %v1507_v19 = vmul.f32 %v2703_v17, %v2699_v4 }
 0xe69   :  { %v1508_v21 = vpack.c.bf16 %v1507_v19, %v1507_v19 }
 0xe6b   :  { %1510 = vst.msk [vmem:[#allocation15 + $0x14] sm:$0xf] %vm415_vm5, %v1508_v21  ;;  %2557 = vmatmul.mubr.msk.bf16.vlgmr.msra.gmra.mxu0 %vm355_vm3, %v1508_v21 }
 0xe6c   :  { %2567 = vmatpush3.bf16.msra.mxu0 %v1611_v24  ;;  %2568 = vmatprep.mubr.msk.bf16.mxu0 %vm2902_vm0, %v2901_v0 }
 0xe6d   :  { %2578 = vmatprep.subr.bf16.mxu0 %v2901_v0 }
 0xec3   :  { %v1433_v25 = vpop.f32.mrf.mxu0 }
 0xec4   :  { %v1439_v26 = vpack.c.bf16 %v1433_v25, %v1433_v25 }
 0xec5   :  { %v2546_v29 = vpop.f32.mrf.mxu0 }
 0xec6   :  { %2569 = vmatmul.mubr.msk.bf16.vlgmr.msra.gmra.mxu0 %vm355_vm3, %v1439_v26 }
 0xec7   :  { %v1436_v30 = vpop.f32.mrf.mxu0  ;;  %2580 = vmatprep.mubr.msk.bf16.mxu0 %vm2902_vm0, %v2901_v0 }
 0xec9   :  { %v2547_v20 = vpop.f32.mrf.mxu0 }
 0xf2b   :  { %v1553_v32 = vpop.f32.mrf.mxu0 }
 0xf2c   :  { %v1559_v33 = vpack.c.bf16 %v1553_v32, %v1553_v32 }
 0xf2d   :  { %v2558_v34 = vpop.f32.mrf.mxu0 }
 0xf2e   :  { %2563 = vmatmul.mubr.msk.bf16.vlgmr.msra.gmra.mxu1 %vm355_vm3, %v1559_v33 }
 0xf2f   :  { %2573 = vmatpush3.bf16.xpose.msra.mxu1 %v1665_v35  ;;  %v1556_v36 = vpop.f32.mrf.mxu0  ;;  %2574 = vmatprep.mubr.msk.bf16.mxu1 %vm2902_vm0, %v2901_v0 }
 0xf30   :  { %2584 = vmatprep.subr.bf16.mxu1 %v2901_v0 }
 0xf31   :  { %v2559_v37 = vpop.f32.mrf.mxu0 }
 0xf32   :  { %v1937_v37 = vld [vmem:[#allocation8 + $0xc] sm:$0xf] }
 0xf36   :  { %2575 = vmatmul.mubr.msk.bf16.vlgmr.msra.gmra.mxu1 %vm355_vm3, %v1655_v38  ;;  %v1942_v38 = vsel %vm425_vm4, %v1937_v37, 0 }
 0xf37   :  { %2586 = vmatprep.mubr.msk.bf16.mxu1 %vm2902_vm0, %v2901_v0  ;;  %2585 = vmatpush3.bf16.msra.mxu1 %v1776_v11 }
 0xf38   :  { %2596 = vmatprep.subr.bf16.mxu1 %v2901_v0 }
 0xf86   :  { %v3319_v39 = vpop.f32.mrf.mxu0 }
 0xf88   :  { %v2570_v41 = vpop.f32.mrf.mxu0 }
 0xf8a   :  { %v1650_v42 = vpop.f32.mrf.mxu0 }
 0xf8c   :  { %v2571_v43 = vpop.f32.mrf.mxu0 }
 0xfee   :  { %v3321_v45 = vpop.f32.mrf.mxu1 }
 0xfef   :  { %v1648_v33 = vadd.f32 %v3319_v39, %v3321_v45 }
 0xff0   :  { %v2564_v46 = vpop.f32.mrf.mxu1 }
 0xff2   :  { %v1604_v48 = vpop.f32.mrf.mxu1 }
 0xff4   :  { %v2565_v49 = vpop.f32.mrf.mxu1 }
 0xff6   :  { %v1701_v50 = vpop.f32.mrf.mxu1 }
 0xff7   :  { %v1707_v51 = vmul.f32 0.35355338, %v1701_v50 }
 0xff8   :  { %v2576_v52 = vpop.f32.mrf.mxu1 }
 0xff9   :  { %v1708_v3 = vsel %vm355_vm3, %v1707_v51, -inf }
 0xffa   :  { %1709 = vmax.xlane.f32.xlu1 %v1708_v3  ;;  %v1704_v54 = vpop.f32.mrf.mxu1 }
 0xffc   :  { %v2577_v55 = vpop.f32.mrf.mxu1 }
0x100b   :  { %1722 = vrot.lane.b32.xlu1 %v3278_v47, %s2907_s25 }
0x100f   :  { %1820 = vrot.lane.b32.xlu1 %v3259_v28, %s2908_s28 }
0x1083   :  { %v1710_v56 = vpop.xlane.xlu1 %1709 }
0x1084   :  { %v1711_v57 = vsub.f32 %v1707_v51, %v1710_v56 }
0x1086   :  { %v1712_v27 = vmul.f32 1.442695, %v1711_v57 }
0x1087   :  { %v1723_v59 = vpop.permute.xlu1 %1722 }
0x1088   :  { %2704 = vpow2.f32 %v1712_v27  ;;  %v1728_v61 = vsel %vm425_vm4, %v1723_v59, 0  ;;  %v2720_v27 = vld [vmem:[%s3461_s30 + $0x8] sm:$0xff] }
0x1089   :  { %2579 = vmatpush3.bf16.msra.mxu0 %v1728_v61 }
0x108a   :  { %2590 = vmatprep.subr.bf16.mxu0 %v2901_v0 }
0x108b   :  { %v1821_v10 = vpop.permute.xlu1 %1820 }
0x1095   :  { %v2705_v63 = vpop.eup %2704 }
0x1096   :  { %v1714_v1 = vsel %vm355_vm3, %v2705_v63, 0.0 }
0x1097   :  { %1715 = vadd.xlane.f32.xlu0 %v1714_v1  ;;  %v3370_v1 = vld [vmem:[%s3451_s12] ss:$0 sm:$0xff] }
0x10ad   :  { %1825 = vrot.lane.b32.xlu0 %v2669_v2, %s2908_s28 }
0x1120   :  { %v1716_v47 = vpop.xlane.xlu0 %1715 }
0x1121   :  { %2706 = vrcp.f32 %v1716_v47 }
0x1124   :  { %v1826_v6 = vpop.permute.xlu0 %1825 }
0x1125   :  { %v1831_v7 = vsel %vm355_vm3, %v1826_v6, 0 }
0x112e   :  { %v2707_v28 = vpop.eup %2706 }
0x112f   :  { %v1718_v5 = vmul.f32 %v2707_v28, %v2705_v63 }
0x1131   :  { %v1719_v4 = vpack.c.bf16 %v1718_v5, %v1718_v5 }
0x1133   :  { %1721 = vst.msk [vmem:[#allocation15 + $0x18] sm:$0xf] %vm415_vm5, %v1719_v4  ;;  %2581 = vmatmul.mubr.msk.bf16.vlgmr.msra.gmra.mxu0 %vm355_vm3, %v1719_v4 }
0x1134   :  { %2591 = vmatpush3.bf16.xpose.msra.mxu0 %v1831_v7  ;;  %2592 = vmatprep.mubr.msk.bf16.mxu0 %vm2902_vm0, %v2901_v0 }
0x1135   :  { %2602 = vmatprep.subr.bf16.mxu0 %v2901_v0 }
0x113b   :  { %2593 = vmatmul.mubr.msk.bf16.vlgmr.msra.gmra.mxu0 %vm355_vm3, %v1821_v10  ;;  %v2670_v10 = vld [vmem:[%s3448_s9 + $0x8] sm:$0xff]  }
0x113c   :  { %2604 = vmatprep.mubr.msk.bf16.mxu0 %vm2902_vm0, %v2901_v0  ;;  %2603 = vmatpush3.bf16.msra.mxu0 %v1942_v38 }
0x113d   :  { %2616 = vmatprep.subr.bf16.mxu0 %v2901_v0 }
0x11f3   :  { %v1764_v12 = vpop.f32.mrf.mxu0 }
0x11f4   :  { %v1770_v13 = vpack.c.bf16 %v1764_v12, %v1764_v12 }
0x11f5   :  { %v2582_v14 = vpop.f32.mrf.mxu0 }
0x11f6   :  { %2587 = vmatmul.mubr.msk.bf16.vlgmr.msra.gmra.mxu1 %vm355_vm3, %v1770_v13 }
0x11f7   :  { %v1767_v53 = vpop.f32.mrf.mxu0  ;;  %2598 = vmatprep.mubr.msk.bf16.mxu1 %vm2902_vm0, %v2901_v0 }
0x11f9   :  { %v2583_v15 = vpop.f32.mrf.mxu0 }
0x11fb   :  { %v1867_v16 = vpop.f32.mrf.mxu0 }
0x11fc   :  { %v1873_v17 = vmul.f32 0.35355338, %v1867_v16 }
0x11fd   :  { %v2594_v18 = vpop.f32.mrf.mxu0 }
0x11fe   :  { %v1874_v19 = vsel %vm355_vm3, %v1873_v17, -inf }
0x11ff   :  { %1875 = vmax.xlane.f32.xlu1 %v1874_v19  ;;  %v1870_v21 = vpop.f32.mrf.mxu0 }
0x1201   :  { %v2595_v24 = vpop.f32.mrf.mxu0 }
0x1202   :  { %v2672_v24 = vld [vmem:[%s3450_s11 + $0x18] sm:$0xff]  }
0x1210   :  { %1888 = vrot.lane.b32.xlu1 %v2669_v2, %s2909_s29 }
0x1288   :  { %v1876_v25 = vpop.xlane.xlu1 %1875 }
0x1289   :  { %v1877_v26 = vsub.f32 %v1873_v17, %v1876_v25  ;;  %v2673_v25 = vld [vmem:[%s3450_s11 + $0x10] sm:$0xff]  }
0x128b   :  { %v1878_v29 = vmul.f32 1.442695, %v1877_v26 }
0x128c   :  { %v1889_v30 = vpop.permute.xlu1 %1888 }
0x128d   :  { %2708 = vpow2.f32 %v1878_v29  ;;  %v1894_v20 = vsel %vm425_vm4, %v1889_v30, 0 }
0x128e   :  { %2597 = vmatpush3.bf16.msra.mxu1 %v1894_v20 }
0x128f   :  { %2608 = vmatprep.subr.bf16.mxu1 %v2901_v0 }
0x129a   :  { %v2709_v31 = vpop.eup %2708 }
0x129b   :  { %v1880_v32 = vsel %vm355_vm3, %v2709_v31, 0.0 }
0x129c   :  { %1881 = vadd.xlane.f32.xlu0 %v1880_v32 }
0x12b6   :  { %v1812_v34 = vpop.f32.mrf.mxu1 }
0x12b7   :  { %v1818_v35 = vadd.f32 %v1812_v34, %v1648_v33  ;;  %v2298_v33 = vld [vmem:[%s3453_s14] ss:$0 sm:$0xff] }
0x12b8   :  { %v2588_v36 = vpop.f32.mrf.mxu1 }
0x12ba   :  { %v1815_v41 = vpop.f32.mrf.mxu1 }
0x12bc   :  { %v2589_v42 = vpop.f32.mrf.mxu1 }
0x1325   :  { %v1882_v43 = vpop.xlane.xlu0 %1881 }
0x1326   :  { %2710 = vrcp.f32 %v1882_v43 }
0x1333   :  { %v2711_v46 = vpop.eup %2710 }
0x1334   :  { %v1884_v48 = vmul.f32 %v2711_v46, %v2709_v31  ;;  %v3406_v31 = vld [vmem:[%s3452_s13] ss:$0 sm:$0xff] }
0x1336   :  { %v1885_v49 = vpack.c.bf16 %v1884_v48, %v1884_v48 }
0x1338   :  { %1887 = vst.msk [vmem:[#allocation15 + $0x1c] sm:$0xf] %vm415_vm5, %v1885_v49  ;;  %2599 = vmatmul.mubr.msk.bf16.vlgmr.msra.gmra.mxu1 %vm355_vm3, %v1885_v49 }
0x1339   :  { %2612 = vmatprep.mubr.msk.bf16.mxu1 %vm2902_vm0, %v2901_v0  ;;  %2609 = vmatpush3.bf16.msra.mxu1 %v2670_v10 }
0x133a   :  { %2610 = vmatprep.subr.bf16.mxu1 %v2901_v0 }
0x133d   :  { %2611 = vmatpush3.bf16.msra.mxu1 %v2671_v8 }
0x13f8   :  { %v1930_v39 = vpop.f32.mrf.mxu1 }
0x13f9   :  { %v1936_v45 = vpack.c.bf16 %v1930_v39, %v1930_v39 }
0x13fa   :  { %v2600_v50 = vpop.f32.mrf.mxu1 }
0x13fb   :  { %2605 = vmatmul.mubr.msk.bf16.vlgmr.msra.gmra.mxu0 %vm355_vm3, %v1936_v45 }
0x13fc   :  { %v1933_v51 = vpop.f32.mrf.mxu1  ;;  %2624 = vmatprep.mubr.msk.bf16.mxu0 %vm2902_vm0, %v2901_v0  ;;  %2617 = vmatpush3.bf16.msra.mxu0 %v2672_v24 }
0x13fd   :  { %2618 = vmatprep.subr.bf16.mxu0 %v2901_v0 }
0x13fe   :  { %v2601_v52 = vpop.f32.mrf.mxu1 }
0x1400   :  { %2619 = vmatpush3.bf16.msra.mxu0 %v2673_v25 }
0x1401   :  { %2620 = vmatprep.subr.bf16.mxu0 %v2901_v0 }
0x14bb   :  { %v1978_v3 = vpop.f32.mrf.mxu0 }
0x14bc   :  { %v1984_v54 = vadd.f32 %v1978_v3, %v1818_v35 }
0x14bd   :  { %v2606_v55 = vpop.f32.mrf.mxu0 }
0x14be   :  { %v1992_v56 = vadd.f32 %v3184_v40, %v1984_v54  ;;  %v1212_v40 = vadd.f32 %v3370_v1, %v3276_v44 }
0x14bf   :  { %v1981_v57 = vpop.f32.mrf.mxu0 }
0x14c0   :  { %v1993_v59 = vadd.f32 %v2720_v27, %v1992_v56  ;;  %v1217_v4 = vadd.f32 %v1212_v40, %v3208_v62 }
0x14c1   :  { %v2607_v61 = vpop.f32.mrf.mxu0 }
0x14c2   :  { %v1994_v63 = vsel %vm157_vm1, %v1993_v59, 0.0  ;;  %v1218_v7 = vsel %vm157_vm1, %v1217_v4, 0.0 }
0x14c3   :  { %1995 = vadd.xlane.f32.xlu0 %v1994_v63 }
0x154c   :  { %v1996_v2 = vpop.xlane.xlu0 %1995 }
0x154d   :  { %v1997_v47 = vmul.f32 0.03125, %v1996_v2 }
0x154f   :  { %v1998_v28 = vsub.f32 %v1993_v59, %v1997_v47 }
0x1551   :  { %v1999_v5 = vmul.f32 %v1998_v28, %v1998_v28 }
0x1553   :  { %v2000_v6 = vsel %vm157_vm1, %v1999_v5, 0.0 }
0x1554   :  { %2001 = vadd.xlane.f32.xlu0 %v2000_v6 }
0x1558   :  { %1219 = vadd.xlane.f32.xlu0 %v1218_v7 }
0x15dd   :  { %v2002_v44 = vpop.xlane.xlu0 %2001 }
0x15de   :  { %v2003_v11 = vmul.f32 0.03125, %v2002_v44 }
0x15e0   :  { %v2004_v12 = vadd.f32 1e-05, %v2003_v11 }
0x15e1   :  { %v1220_v62 = vpop.xlane.xlu0 %1219 }
0x15e2   :  { %2712 = vrsqrt.f32 %v2004_v12  ;;  %v1221_v13 = vmul.f32 0.03125, %v1220_v62 }
0x15e4   :  { %v1222_v14 = vsub.f32 %v1217_v4, %v1221_v13 }
0x15e6   :  { %v1223_v53 = vmul.f32 %v1222_v14, %v1222_v14 }
0x15e8   :  { %v1224_v15 = vsel %vm157_vm1, %v1223_v53, 0.0 }
0x15e9   :  { %1225 = vadd.xlane.f32.xlu0 %v1224_v15 }
0x15ef   :  { %v2713_v16 = vpop.eup %2712 }
0x15f0   :  { %v2006_v17 = vmul.f32 %v2713_v16, %v1998_v28 }
0x15f2   :  { %v2014_v18 = vmul.f32 %v3202_v58, %v2006_v17  ;;  %v2674_v58 = vld [vmem:[%s3450_s11 + $0x8] sm:$0xff]  }
0x15f3   :  { %2621 = vmatpush3.bf16.msra.mxu0 %v2674_v58 }
0x15f4   :  { %v2022_v19 = vadd.f32 %v3204_v60, %v2014_v18  ;;  %v2675_v60 = vld [vmem:[%s3450_s11] sm:$0xff]   ;;  %2622 = vmatprep.subr.bf16.mxu0 %v2901_v0  ;;  %s2910_s11 = smov [#allocation15]  }
0x15f5   :  { %s2231_s13 = sshll.u32 %s2910_s11, 4  ;;  %s2232_s13 = int_to_ptr.vmem [resolvable:$true] %s2231_s13 }
0x15f6   :  { %v2023_v21 = vpack.c.bf16 %v2022_v19, %v2022_v19  ;;  %s2841_s14 = scalar_lea.vmem %s2232_s13, 512  ;;  %p2846_p3 = scmp.lt.s32.totalorder %s2232_s13, %s2232_s13 }
0x15f7   :  { %2623 = vmatpush3.bf16.msra.mxu0 %v2675_v60  ;;  %p2842_p2 = scmp.ne.s32.totalorder %s2232_s13, %s2841_s14  ;;  %p2847_p4 = scmp.lt.s32.totalorder %s2841_s14, %s2841_s14 }
0x15f8   :  { %2613 = vmatmul.mubr.msk.bf16.vlgmr.msra.gmra.mxu1 %vm157_vm1, %v2023_v21 }
0x15f9   :  { %p2848_p5 = por %p2847_p4, %p2846_p3 }
0x15fb   :  { %p2849_p6 = pnand %p2848_p5, %p2842_p2 }
0x1672   :  { %v1226_v26 = vpop.xlane.xlu0 %1225 }
0x1673   :  { %v1227_v29 = vmul.f32 0.03125, %v1226_v26 }
0x1675   :  { %v1228_v30 = vadd.f32 1e-05, %v1227_v29 }
0x1677   :  { %2714 = vrsqrt.f32 %v1228_v30 }
0x1684   :  { %v2715_v20 = vpop.eup %2714 }
0x1685   :  { %v1230_v32 = vmul.f32 %v2715_v20, %v1222_v14 }
0x1687   :  { %v1238_v34 = vmul.f32 %v3406_v31, %v1230_v32 }
0x1689   :  { %v1246_v35 = vadd.f32 %v2298_v33, %v1238_v34 }
0x168b   :  { %1247 = vst.msk [vmem:[#allocation14] sm:$0xff] %vm157_vm1, %v1246_v35 }
0x16b8   :  { %v2084_v0 = vpop.f32.mrf.mxu1 }
0x16b9   :  { %v2085_v36 = vadd.f32 %v3251_v9, %v2084_v0 }
0x16ba   :  { %v2614_v37 = vpop.f32.mrf.mxu1 }
0x16bb   :  { %v2091_v38 = vmul.f32 0.044715, %v2085_v36  ;;  %v2090_v45 = vmul.f32 0.5, %v2085_v36 }
0x16bc   :  { %v2087_v41 = vpop.f32.mrf.mxu1 }
0x16bd   :  { %v2092_v42 = vmul.f32 %v2091_v38, %v2085_v36 }
0x16be   :  { %v2615_v43 = vpop.f32.mrf.mxu1 }
0x16bf   :  { %v2093_v46 = vmul.f32 %v2092_v42, %v2085_v36 }
0x16c1   :  { %v2094_v48 = vadd.f32 %v2093_v46, %v2085_v36 }
0x16c3   :  { %v2095_v49 = vmul.f32 0.7978846, %v2094_v48 }
0x16c5   :  { %2716 = vtanh.f32 %v2095_v49 }
0x16d2   :  { %v2717_v39 = vpop.eup %2716 }
0x16d3   :  { %v2097_v50 = vadd.f32 1.0, %v2717_v39 }
0x16d5   :  { %v2098_v51 = vmul.f32 %v2097_v50, %v2090_v45 }
0x16d7   :  { %v2099_v52 = vpack.c.bf16 %v2098_v51, %v2098_v51 }
0x16d9   :  { %2625 = vmatmul.mubr.msk.bf16.vlgmr.msra.gmra.mxu0 %vm1173_vm6, %v2099_v52 }
0x1799   :  { %v2176_v3 = vpop.f32.mrf.mxu0 }
0x179a   :  { %v2177_v54 = vadd.f32 %v3370_v1, %v2176_v3 }
0x179b   :  { %v2626_v9 = vpop.f32.mrf.mxu0 }
0x179c   :  { %v2182_v55 = vadd.f32 %v2177_v54, %v2022_v19 }
0x179d   :  { %v2179_v56 = vpop.f32.mrf.mxu0 }
0x179e   :  { %v2183_v57 = vsel %vm157_vm1, %v2182_v55, 0.0 }
0x179f   :  { %2184 = vadd.xlane.f32.xlu1 %v2183_v57  ;;  %v2627_v27 = vpop.f32.mrf.mxu0 }
0x1828   :  { %v2185_v59 = vpop.xlane.xlu1 %2184 }
0x1829   :  { %v2186_v61 = vmul.f32 0.03125, %v2185_v59 }
0x182b   :  { %v2187_v63 = vsub.f32 %v2182_v55, %v2186_v61 }
0x182d   :  { %v2188_v2 = vmul.f32 %v2187_v63, %v2187_v63 }
0x182f   :  { %v2189_v47 = vsel %vm157_vm1, %v2188_v2, 0.0 }
0x1830   :  { %2190 = vadd.xlane.f32.xlu0 %v2189_v47 }
0x1846   :  { %348 = vrot.lane.b32.xlu0 %v3081_v23, %s2904_s4 }
0x184a   :  { %1319 = vrot.lane.b32.xlu0 %v3255_v22, %s2904_s4 }
0x184b   :  { %2852 = shalt.err (!%p2849_p6)
}
0x184c   :  { %2237 = dma.vmem_to_hbm [thread:$0]  %s2232_s13, 512, %s3455_s16, [#allocation16], %s2897_s6, %s2897_s6, %s2898_s27   ;;  %vm351_vm7 = vcmask 31744  }
0x184d   :  { %s2911_s8 = smov [#allocation14]  }
0x184e   :  { %s2219_s30 = sshll.u32 %s2911_s8, 4  ;;  %s2220_s30 = int_to_ptr.vmem [resolvable:$true] %s2219_s30 }
0x184f   :  { %s2861_s16 = scalar_lea.vmem %s2220_s30, 256  ;;  %p2866_p8 = scmp.lt.s32.totalorder %s2220_s30, %s2220_s30 }
0x1850   :  { %p2862_p7 = scmp.ne.s32.totalorder %s2220_s30, %s2861_s16  ;;  %p2867_p9 = scmp.lt.s32.totalorder %s2861_s16, %s2861_s16 }
0x1852   :  { %p2868_p10 = por %p2867_p9, %p2866_p8 }
0x1854   :  { %p2869_p11 = pnand %p2868_p10, %p2862_p7 }
0x18b9   :  { %v2191_v23 = vpop.xlane.xlu0 %2190 }
0x18ba   :  { %v2192_v1 = vmul.f32 0.03125, %v2191_v23 }
0x18bc   :  { %v2193_v22 = vadd.f32 1e-05, %v2192_v1 }
0x18bd   :  { %v349_v40 = vpop.permute.xlu0 %348 }
0x18be   :  { %2718 = vrsqrt.f32 %v2193_v22  ;;  %352 = vst.msk [vmem:[%s3456_s17] sm:$0xff] %vm351_vm7, %v349_v40 }
0x18c1   :  { %v1320_v28 = vpop.permute.xlu0 %1319 }
0x18c2   :  { %2304 = vst.msk [vmem:[%s3456_s17 + $0x8] sm:$0xff] %vm351_vm7, %v1320_v28 }
0x18cb   :  { %v2719_v5 = vpop.eup %2718 }
0x18cc   :  { %v2195_v6 = vmul.f32 %v2719_v5, %v2187_v63 }
0x18ce   :  { %v2203_v4 = vmul.f32 %v3406_v31, %v2195_v6 }
0x18d0   :  { %v2211_v7 = vadd.f32 %v2298_v33, %v2203_v4 }
0x18d2   :  { %2213 = vst.msk [vmem:[#allocation14 + $0x8] sm:$0xff] %vm157_vm1, %v2211_v7 }
0x18d3   :  { %2872 = shalt.err (!%p2869_p11)
}
0x18d4   :  { %s2912_s6 = smov 128   ;;  %s2913_s27 = smov 8  }
0x18d5   :  { %2225 = dma.vmem_to_hbm [thread:$0]  %s2220_s30, 256, %s3454_s15, [#allocation5], %s2912_s6, %s2912_s6, %s2913_s27  }
0x18d6   :  { %2889 = dma.done.wait [#allocation5], 256  }
0x18d7   :  { %2890 = vsyncadd [#allocation5], 4294967040 }
0x18d8   :  { %2891 = dma.done.wait [#allocation16], 512  }
0x18d9   :  { %2892 = vsyncadd [#allocation16], 4294966784 }
0x18da   :  { %2248 = vsyncpa [#allocation4], 1 }
0x18db   :  { %2249 = vsyncpa [#allocation7], 1 }
0x18dc   :  { %2250 = vsyncpa [#allocation10], 1 }
0x18dd   :  { %2251 = vsyncpa [#allocation13], 1 }
0x18de   :  { %2252 = vsyncpa [#allocation5], 1 }
0x18df   :  { %2253 = vsyncpa [#allocation16], 1 }

</bundles_post_ra>
